<compile_context>
chip_gen: v7x
topology: tpu7x:2x2x1
jax: 0.10.0
libtpu: 0.0.40
codegen_flags: <defaults>
</compile_context>

<pallas_src>
import jax
import jax.numpy as jnp
from jax.experimental import pallas as pl
from jax.experimental.pallas import tpu as pltpu


def _make_kernel(n_sun: int, n_out: int, inv_hw: float):
    def kernel(x_ref, wt_ref, b_ref, sun_ref, son_ref, acc_ref):
        # x_ref:   [Nb, C, tHW]     native channels-major tile
        # wt_ref:  [n_out, C]       fused (sun ++ son) weights, transposed
        # b_ref:   [n_out, 1]       fused bias column
        # sun_ref: [Nb, n_sun, 1]   output (mean of relu(conv))
        # son_ref: [Nb, n_out-n_sun, 1]
        # acc_ref: [Nb, n_out, 1]   f32 running spatial sums (VMEM scratch)
        h = pl.program_id(1)
        n_hw = pl.num_programs(1)
        nb = x_ref.shape[0]

        @pl.when(h == 0)
        def _():
            acc_ref[...] = jnp.zeros_like(acc_ref)

        w = wt_ref[...]                      # [n_out, C]
        bias = b_ref[...]                    # [n_out, 1]
        # relu floor per output row: 0.0 for sun rows, -inf (no relu) for son.
        row = jax.lax.broadcasted_iota(jnp.int32, (n_out, 1), 0)
        floor = jnp.where(row < n_sun, 0.0, -jnp.inf).astype(jnp.float32)

        for b in range(nb):                  # static unroll over batch block
            # fused 1x1 conv: [n_out, C] @ [C, tHW] -> [n_out, tHW]
            y = jnp.dot(w, x_ref[b], preferred_element_type=jnp.float32)
            y = jnp.maximum(y + bias, floor)               # bias + selective relu
            acc_ref[b] += jnp.sum(y, axis=1, keepdims=True)  # [n_out, 1]

        @pl.when(h == n_hw - 1)
        def _():
            res = acc_ref[...] * inv_hw      # mean over all HW positions
            sun_ref[...] = res[:, :n_sun, :]
            son_ref[...] = res[:, n_sun:, :]

    return kernel


def _largest_divisor_at_most(n: int, k: int) -> int:
    for d in range(min(n, max(k, 1)), 0, -1):
        if n % d == 0:
            return d
    return 1


@jax.jit
def net_sunson_top(x_nchw, w_sun, b_sun, w_son, b_son):
    """NetSUNSoNTopBase forward.

    x_nchw : [N, C, H, W] float32 (native PyTorch NCHW layout)
    w_sun  : [C, 34] 1x1-conv weight stored as [C_in, C_out]
    b_sun  : [34]
    w_son  : [C, 2]
    b_son  : [2]
    returns (x_sun [N, 34], x_son [N, 2])
    """
    N, C, H, W = x_nchw.shape
    HW = H * W
    n_sun = w_sun.shape[1]
    n_son = w_son.shape[1]
    n_out = n_sun + n_son

    # Native layout: [N, C, HW] -- free reshape, no transpose / extra HBM pass.
    x = x_nchw.reshape(N, C, HW)

    # Fused weights / bias: one MXU pass covers both heads (tiny, one-time).
    wt = jnp.concatenate([w_sun, w_son], axis=1).T            # [n_out, C]
    b_all = jnp.concatenate([b_sun, b_son]).reshape(n_out, 1)  # [n_out, 1]

    # ---- tile selection --------------------------------------------------
    # Spatial tile must be a multiple of 128 (lane constraint) or all of HW.
    if HW % 128 == 0:
        t_hw = 128
        for cand in (512, 256, 128):
            if HW % cand == 0:
                t_hw = cand
                break
    else:
        # TODO(synk): very large HW that is not a multiple of 128 would need a
        # channel-tiled reduction instead of a full-HW block.
        t_hw = HW
    # Pack several batch elements per step when HW is small (~<=2 MiB / step).
    bytes_per_batch = C * t_hw * x.dtype.itemsize
    nb = _largest_divisor_at_most(
        N, max(1, (2 * 1024 * 1024) // max(bytes_per_batch, 1)))

    grid = (N // nb, HW // t_hw)
    inv_hw = 1.0 / float(HW)
    kernel = _make_kernel(n_sun, n_out, inv_hw)

    grid_spec = pltpu.PrefetchScalarGridSpec(
        num_scalar_prefetch=0,
        grid=grid,
        in_specs=[
            pl.BlockSpec((nb, C, t_hw), lambda n, h: (n, 0, h)),   # x tile
            pl.BlockSpec((n_out, C), lambda n, h: (0, 0)),         # fused W^T
            pl.BlockSpec((n_out, 1), lambda n, h: (0, 0)),         # fused bias
        ],
        out_specs=[
            pl.BlockSpec((nb, n_sun, 1), lambda n, h: (n, 0, 0)),
            pl.BlockSpec((nb, n_son, 1), lambda n, h: (n, 0, 0)),
        ],
        scratch_shapes=[pltpu.VMEM((nb, n_out, 1), jnp.float32)],
    )

    sun3, son3 = pl.pallas_call(
        kernel,
        out_shape=(
            jax.ShapeDtypeStruct((N, n_sun, 1), jnp.float32),
            jax.ShapeDtypeStruct((N, n_son, 1), jnp.float32),
        ),
        grid_spec=grid_spec,
        compiler_params=pltpu.CompilerParams(
            dimension_semantics=("parallel", "arbitrary"),
            vmem_limit_bytes=32 * 1024 * 1024,
        ),
    )(x, wt, b_all)

    # torch .squeeze(): with N > 1 this yields [N, 34] and [N, 2].
    return sun3.reshape(N, n_sun), son3.reshape(N, n_son)


if __name__ == "__main__":
    key = jax.random.PRNGKey(0)
    kx, kws, kbs, kwn, kbn = jax.random.split(key, 5)

    # Small but module-consistent shapes: batch=2, channels=2048, spatial=8x8.
    N, C, H, W = 2, 2048, 8, 8
    x = jax.random.normal(kx, (N, C, H, W), dtype=jnp.float32)

    # Deterministic synthetic params (1x1 conv weights stored as [C_in, C_out]).
    w_sun = jax.random.normal(kws, (C, 34), dtype=jnp.float32) * 0.02
    b_sun = jax.random.normal(kbs, (34,), dtype=jnp.float32) * 0.02
    w_son = jax.random.normal(kwn, (C, 2), dtype=jnp.float32) * 0.02
    b_son = jax.random.normal(kbn, (2,), dtype=jnp.float32) * 0.02

    x_sun, x_son = net_sunson_top(x, w_sun, b_sun, w_son, b_son)
    jax.block_until_ready((x_sun, x_son))

    # Pure-JAX reference check (same math, no Pallas).
    xf = jnp.transpose(x, (0, 2, 3, 1)).reshape(N, H * W, C)
    ref_sun = jnp.mean(
        jnp.maximum(jnp.einsum("nsc,co->nso", xf, w_sun) + b_sun, 0.0), axis=1)
    ref_son = jnp.mean(jnp.einsum("nsc,co->nso", xf, w_son) + b_son, axis=1)
    assert x_sun.shape == (N, 34) and x_son.shape == (N, 2)
    assert jnp.allclose(x_sun, ref_sun, atol=1e-4, rtol=1e-4)
    assert jnp.allclose(x_son, ref_son, atol=1e-4, rtol=1e-4)

    print("KERNEL_OK")
</pallas_src>

<mosaic_0001>
module attributes {stable_mosaic.version = 11 : i64} {
  func.func @kernel(%arg0: i32, %arg1: i32, %arg2: memref<2x2048x64xf32, #tpu.memory_space<vmem>>, %arg3: memref<36x2048xf32, #tpu.memory_space<vmem>>, %arg4: memref<36x1xf32, #tpu.memory_space<vmem>>, %arg5: memref<2x34x1xf32, #tpu.memory_space<vmem>>, %arg6: memref<2x2x1xf32, #tpu.memory_space<vmem>>, %arg7: memref<2x36x1xf32, #tpu.memory_space<vmem>>) attributes {dimension_semantics = [#tpu.dimension_semantics<parallel>, #tpu.dimension_semantics<arbitrary>], iteration_bounds = array<i64: 1, 1>, scalar_prefetch = 0 : i64, scratch_operands = 1 : i64, tpu.core_type = #tpu.core_type<tc>, window_params = [{transform_indices = @transform_0, window_bounds = array<i64: 2, 2048, 64>}, {pipeline_mode = #tpu.pipeline_mode<synchronous>, transform_indices = @transform_1, window_bounds = array<i64: 36, 2048>}, {pipeline_mode = #tpu.pipeline_mode<synchronous>, transform_indices = @transform_2, window_bounds = array<i64: 36, 1>}, {transform_indices = @transform_3, window_bounds = array<i64: 2, 34, 1>}, {transform_indices = @transform_4, window_bounds = array<i64: 2, 2, 1>}]} {
    %c0_i32 = arith.constant 0 : i32
    %0 = arith.cmpi eq, %arg1, %c0_i32 : i32
    %1 = arith.extui %0 : i1 to i32
    %c0_i32_0 = arith.constant 0 : i32
    %2 = arith.cmpi ne, %1, %c0_i32_0 : i32
    scf.if %2 {
      %cst_28 = arith.constant 0.000000e+00 : f32
      %44 = vector.broadcast %cst_28 : f32 to vector<2x36x1xf32>
      %c0_29 = arith.constant 0 : index
      %c0_30 = arith.constant 0 : index
      %c0_31 = arith.constant 0 : index
      %45 = vector.load %arg7[%c0_29, %c0_30, %c0_31] : memref<2x36x1xf32, #tpu.memory_space<vmem>>, vector<2x36x1xf32>
      tpu.vector_store %arg7[%c0_29, %c0_30, %c0_31], %44 {strides = array<i32>} : memref<2x36x1xf32, #tpu.memory_space<vmem>>, vector<2x36x1xf32>,
    } else {
    }
    %c0 = arith.constant 0 : index
    %c0_1 = arith.constant 0 : index
    %3 = vector.load %arg3[%c0, %c0_1] : memref<36x2048xf32, #tpu.memory_space<vmem>>, vector<36x2048xf32>
    %c0_2 = arith.constant 0 : index
    %c0_3 = arith.constant 0 : index
    %4 = vector.load %arg4[%c0_2, %c0_3] : memref<36x1xf32, #tpu.memory_space<vmem>>, vector<36x1xf32>
    %5 = tpu.iota {dimensions = array<i32: 0>} : vector<36x1xi32>
    %c34_i32 = arith.constant 34 : i32
    %6 = vector.broadcast %c34_i32 : i32 to vector<36x1xi32>
    %7 = arith.cmpi slt, %5, %6 : vector<36x1xi32>
    %cst = arith.constant 0.000000e+00 : f32
    %cst_4 = arith.constant 0xFF800000 : f32
    %8 = vector.broadcast %cst : f32 to vector<36x1xf32>
    %9 = vector.broadcast %cst_4 : f32 to vector<36x1xf32>
    %10 = arith.select %7, %8, %9 : vector<36x1xi1>, vector<36x1xf32>
    %c0_5 = arith.constant 0 : index
    %c0_6 = arith.constant 0 : index
    %c0_7 = arith.constant 0 : index
    %11 = vector.load %arg2[%c0_5, %c0_6, %c0_7] : memref<2x2048x64xf32, #tpu.memory_space<vmem>>, vector<1x2048x64xf32>
    %12 = vector.shape_cast %11 : vector<1x2048x64xf32> to vector<2048x64xf32>
    %cst_8 = arith.constant dense<0.000000e+00> : vector<36x64xf32>
    %13 = tpu.matmul %3, %12, %cst_8 {dimension_numbers = #tpu.dot_dimension_numbers<[1], [0], [0], [1], [0, 0, 1, 1], [], []>} : vector<36x2048xf32>, vector<2048x64xf32>, vector<36x64xf32> -> vector<36x64xf32>
    %14 = vector.broadcast %4 : vector<36x1xf32> to vector<36x64xf32>
    %15 = arith.addf %13, %14 : vector<36x64xf32>
    %16 = vector.broadcast %10 : vector<36x1xf32> to vector<36x64xf32>
    %17 = arith.maximumf %15, %16 : vector<36x64xf32>
    %c0_9 = arith.constant 0 : index
    %c0_10 = arith.constant 0 : index
    %c0_11 = arith.constant 0 : index
    %18 = vector.load %arg7[%c0_9, %c0_10, %c0_11] : memref<2x36x1xf32, #tpu.memory_space<vmem>>, vector<1x36x1xf32>
    %19 = vector.shape_cast %18 : vector<1x36x1xf32> to vector<36x1xf32>
    %cst_12 = arith.constant dense<0.000000e+00> : vector<36xf32>
    %20 = vector.multi_reduction <add>, %17, %cst_12 [1] : vector<36x64xf32> to vector<36xf32>
    %21 = vector.shape_cast %20 : vector<36xf32> to vector<36x1xf32>
    %22 = arith.addf %19, %21 : vector<36x1xf32>
    %c0_13 = arith.constant 0 : index
    %c0_14 = arith.constant 0 : index
    %c0_15 = arith.constant 0 : index
    %23 = vector.load %arg7[%c0_13, %c0_14, %c0_15] : memref<2x36x1xf32, #tpu.memory_space<vmem>>, vector<1x36x1xf32>
    %24 = vector.shape_cast %23 : vector<1x36x1xf32> to vector<36x1xf32>
    %25 = vector.shape_cast %22 : vector<36x1xf32> to vector<1x36x1xf32>
    tpu.vector_store %arg7[%c0_13, %c0_14, %c0_15], %25 {strides = array<i32>} : memref<2x36x1xf32, #tpu.memory_space<vmem>>, vector<1x36x1xf32>,
    %c1 = arith.constant 1 : index
    %c0_16 = arith.constant 0 : index
    %c0_17 = arith.constant 0 : index
    %26 = vector.load %arg2[%c1, %c0_16, %c0_17] : memref<2x2048x64xf32, #tpu.memory_space<vmem>>, vector<1x2048x64xf32>
    %27 = vector.shape_cast %26 : vector<1x2048x64xf32> to vector<2048x64xf32>
    %cst_18 = arith.constant dense<0.000000e+00> : vector<36x64xf32>
    %28 = tpu.matmul %3, %27, %cst_18 {dimension_numbers = #tpu.dot_dimension_numbers<[1], [0], [0], [1], [0, 0, 1, 1], [], []>} : vector<36x2048xf32>, vector<2048x64xf32>, vector<36x64xf32> -> vector<36x64xf32>
    %29 = vector.broadcast %4 : vector<36x1xf32> to vector<36x64xf32>
    %30 = arith.addf %28, %29 : vector<36x64xf32>
    %31 = vector.broadcast %10 : vector<36x1xf32> to vector<36x64xf32>
    %32 = arith.maximumf %30, %31 : vector<36x64xf32>
    %c1_19 = arith.constant 1 : index
    %c0_20 = arith.constant 0 : index
    %c0_21 = arith.constant 0 : index
    %33 = vector.load %arg7[%c1_19, %c0_20, %c0_21] : memref<2x36x1xf32, #tpu.memory_space<vmem>>, vector<1x36x1xf32>
    %34 = vector.shape_cast %33 : vector<1x36x1xf32> to vector<36x1xf32>
    %cst_22 = arith.constant dense<0.000000e+00> : vector<36xf32>
    %35 = vector.multi_reduction <add>, %32, %cst_22 [1] : vector<36x64xf32> to vector<36xf32>
    %36 = vector.shape_cast %35 : vector<36xf32> to vector<36x1xf32>
    %37 = arith.addf %34, %36 : vector<36x1xf32>
    %c1_23 = arith.constant 1 : index
    %c0_24 = arith.constant 0 : index
    %c0_25 = arith.constant 0 : index
    %38 = vector.load %arg7[%c1_23, %c0_24, %c0_25] : memref<2x36x1xf32, #tpu.memory_space<vmem>>, vector<1x36x1xf32>
    %39 = vector.shape_cast %38 : vector<1x36x1xf32> to vector<36x1xf32>
    %40 = vector.shape_cast %37 : vector<36x1xf32> to vector<1x36x1xf32>
    tpu.vector_store %arg7[%c1_23, %c0_24, %c0_25], %40 {strides = array<i32>} : memref<2x36x1xf32, #tpu.memory_space<vmem>>, vector<1x36x1xf32>,
    %c0_i32_26 = arith.constant 0 : i32
    %41 = arith.cmpi eq, %arg1, %c0_i32_26 : i32
    %42 = arith.extui %41 : i1 to i32
    %c0_i32_27 = arith.constant 0 : i32
    %43 = arith.cmpi ne, %42, %c0_i32_27 : i32
    scf.if %43 {
      %c0_28 = arith.constant 0 : index
      %c0_29 = arith.constant 0 : index
      %c0_30 = arith.constant 0 : index
      %44 = vector.load %arg7[%c0_28, %c0_29, %c0_30] : memref<2x36x1xf32, #tpu.memory_space<vmem>>, vector<2x36x1xf32>
      %cst_31 = arith.constant 1.562500e-02 : f32
      %45 = vector.broadcast %cst_31 : f32 to vector<2x36x1xf32>
      %46 = arith.mulf %44, %45 : vector<2x36x1xf32>
      %47 = vector.extract_strided_slice %46 {offsets = [0, 0, 0], sizes = [2, 34, 1], strides = [1, 1, 1]} : vector<2x36x1xf32> to vector<2x34x1xf32>
      %c0_32 = arith.constant 0 : index
      %c0_33 = arith.constant 0 : index
      %c0_34 = arith.constant 0 : index
      %48 = vector.load %arg5[%c0_32, %c0_33, %c0_34] : memref<2x34x1xf32, #tpu.memory_space<vmem>>, vector<2x34x1xf32>
      tpu.vector_store %arg5[%c0_32, %c0_33, %c0_34], %47 {strides = array<i32>} : memref<2x34x1xf32, #tpu.memory_space<vmem>>, vector<2x34x1xf32>,
      %49 = vector.extract_strided_slice %46 {offsets = [0, 34, 0], sizes = [2, 2, 1], strides = [1, 1, 1]} : vector<2x36x1xf32> to vector<2x2x1xf32>
      %c0_35 = arith.constant 0 : index
      %c0_36 = arith.constant 0 : index
      %c0_37 = arith.constant 0 : index
      %50 = vector.load %arg6[%c0_35, %c0_36, %c0_37] : memref<2x2x1xf32, #tpu.memory_space<vmem>>, vector<2x2x1xf32>
      tpu.vector_store %arg6[%c0_35, %c0_36, %c0_37], %49 {strides = array<i32>} : memref<2x2x1xf32, #tpu.memory_space<vmem>>, vector<2x2x1xf32>,
    } else {
    }
    return
  }
  func.func @transform_0(%arg0: i32, %arg1: i32) -> (i32, i32, i32) {
    %c0_i32 = arith.constant 0 : i32
    %c0_i32_0 = arith.constant 0 : i32
    return %arg0, %c0_i32, %arg1 : i32, i32, i32
  }
  func.func @transform_1(%arg0: i32, %arg1: i32) -> (i32, i32) {
    %c0_i32 = arith.constant 0 : i32
    %c0_i32_0 = arith.constant 0 : i32
    %c0_i32_1 = arith.constant 0 : i32
    return %c0_i32, %c0_i32_0 : i32, i32
  }
  func.func @transform_2(%arg0: i32, %arg1: i32) -> (i32, i32) {
    %c0_i32 = arith.constant 0 : i32
    %c0_i32_0 = arith.constant 0 : i32
    %c0_i32_1 = arith.constant 0 : i32
    return %c0_i32, %c0_i32_0 : i32, i32
  }
  func.func @transform_3(%arg0: i32, %arg1: i32) -> (i32, i32, i32) {
    %c0_i32 = arith.constant 0 : i32
    %c0_i32_0 = arith.constant 0 : i32
    %c0_i32_1 = arith.constant 0 : i32
    return %arg0, %c0_i32, %c0_i32_0 : i32, i32, i32
  }
  func.func @transform_4(%arg0: i32, %arg1: i32) -> (i32, i32, i32) {
    %c0_i32 = arith.constant 0 : i32
    %c0_i32_0 = arith.constant 0 : i32
    %c0_i32_1 = arith.constant 0 : i32
    return %arg0, %c0_i32, %c0_i32_0 : i32, i32, i32
  }
}

</mosaic_0001>

<bundles_post_ra>
// kernel: net_sunson_top.1
= control target key start
LH: loop header
LB: loop body
LE: loop exit
PB: predicated region body
PF: predicated region fallthrough
CT: control target
= control target key end

     0   :  { %v3836_v3 = vmov 0   ;;  %vm1144_vm0 = vcmask 523264   ;;  %vm20_vm1 = vcmask 7168   ;;  %vm1157_vm3 = vcmask 519168   ;;  %s6010_s0 = inlined_call_operand.vmem [shape: f32[2,2048,64], index: 0, kind: input, shape index: {}]   ;;  %s6011_s1 = inlined_call_operand.vmem [shape: f32[36,2048], index: 1, kind: input, shape index: {}]   ;;  %s6012_s2 = inlined_call_operand.vmem [shape: f32[36,1], index: 2, kind: input, shape index: {}]   ;;  %s6013_s3 = inlined_call_operand.vmem [shape: f32[2,34,1], index: 3, kind: output, shape index: {0}]   ;;  %s6014_s4 = inlined_call_operand.vmem [shape: f32[2,2,1], index: 4, kind: output, shape index: {1}]  }
   0x1   :  { %v149_v0 = vld [vmem:[%s6010_s0 + $0x80] sm:$0xff]  ;;  %v150_v1 = vld [vmem:[%s6010_s0 + $0x88] sm:$0xff]  ;;  %3754 = vset.pattern.permute.xlu0 %v3836_v3  ;;  %3755 = vset.pattern.permute.xlu1 %v3836_v3  ;;  %v151_v12 = vld [vmem:[%s6010_s0 + $0x90] sm:$0xff]  ;;  %vm25_vm4 = vcmask 3072   ;;  %vm2213_vm5 = vcmask 1024   ;;  %vm2220_vm6 = vcmask 3074  }
   0x2   :  { %v133_v2 = vld [vmem:[%s6010_s0] sm:$0xff]  ;;  %v3239_v4 = vpack.c.bf16 %v150_v1, %v149_v0  ;;  %v134_v5 = vld [vmem:[%s6010_s0 + $0x8] sm:$0xff]  ;;  %v152_v14 = vld [vmem:[%s6010_s0 + $0x98] sm:$0xff] }
   0x3   :  { %v181_v6 = vld [vmem:[%s6010_s0 + $0x180] sm:$0xff]  ;;  %v182_v7 = vld [vmem:[%s6010_s0 + $0x188] sm:$0xff]  ;;  %v3241_v8 = vpack.c.bf16 %v134_v5, %v133_v2  ;;  %v135_v15 = vld [vmem:[%s6010_s0 + $0x10] sm:$0xff]  ;;  %v3243_v17 = vpack.c.bf16 %v152_v14, %v151_v12 }
   0x4   :  { %v3271_v9 = vpack.c.bf16 %v182_v7, %v181_v6  ;;  %v165_v10 = vld [vmem:[%s6010_s0 + $0x100] sm:$0xff]  ;;  %v166_v11 = vld [vmem:[%s6010_s0 + $0x108] sm:$0xff]  ;;  %3240 = vmatprep.subr.bf16.mxu0 %v3239_v4  ;;  %v136_v16 = vld [vmem:[%s6010_s0 + $0x18] sm:$0xff] }
   0x5   :  { %v3273_v13 = vpack.c.bf16 %v166_v11, %v165_v10  ;;  %3242 = vmatpush3.bf16.msra.mxu0 %v3241_v8  ;;  %v3245_v18 = vpack.c.bf16 %v136_v16, %v135_v15  ;;  %v183_v19 = vld [vmem:[%s6010_s0 + $0x190] sm:$0xff]  ;;  %v184_v20 = vld [vmem:[%s6010_s0 + $0x198] sm:$0xff]  ;;  %v153_v24 = vld [vmem:[%s6010_s0 + $0xa0] sm:$0xff] }
   0x6   :  { %3272 = vmatprep.subr.bf16.mxu1 %v3271_v9  ;;  %v167_v21 = vld [vmem:[%s6010_s0 + $0x110] sm:$0xff]  ;;  %v3275_v22 = vpack.c.bf16 %v184_v20, %v183_v19  ;;  %v168_v23 = vld [vmem:[%s6010_s0 + $0x118] sm:$0xff]  ;;  %v154_v25 = vld [vmem:[%s6010_s0 + $0xa8] sm:$0xff]  ;;  %3244 = vmatprep.subr.bf16.mxu0 %v3243_v17 }
   0x7   :  { %3274 = vmatpush3.bf16.msra.mxu1 %v3273_v13  ;;  %v3277_v26 = vpack.c.bf16 %v168_v23, %v167_v21  ;;  %v3247_v27 = vpack.c.bf16 %v154_v25, %v153_v24  ;;  %v137_v28 = vld [vmem:[%s6010_s0 + $0x20] sm:$0xff]  ;;  %v138_v29 = vld [vmem:[%s6010_s0 + $0x28] sm:$0xff]  ;;  %v155_v36 = vld [vmem:[%s6010_s0 + $0xb0] sm:$0xff] }
   0x8   :  { %v185_v30 = vld [vmem:[%s6010_s0 + $0x1a0] sm:$0xff]  ;;  %3276 = vmatprep.subr.bf16.mxu1 %v3275_v22  ;;  %v186_v31 = vld [vmem:[%s6010_s0 + $0x1a8] sm:$0xff]  ;;  %v3249_v34 = vpack.c.bf16 %v138_v29, %v137_v28  ;;  %v156_v37 = vld [vmem:[%s6010_s0 + $0xb8] sm:$0xff] }
   0x9   :  { %v169_v32 = vld [vmem:[%s6010_s0 + $0x120] sm:$0xff]  ;;  %v170_v33 = vld [vmem:[%s6010_s0 + $0x128] sm:$0xff]  ;;  %3246 = vmatpush3.bf16.msra.mxu0 %v3245_v18  ;;  %v3279_v35 = vpack.c.bf16 %v186_v31, %v185_v30  ;;  %v139_v38 = vld [vmem:[%s6010_s0 + $0x30] sm:$0xff]  ;;  %v3251_v40 = vpack.c.bf16 %v156_v37, %v155_v36 }
   0xa   :  { %3248 = vmatprep.subr.bf16.mxu0 %v3247_v27  ;;  %v3281_v39 = vpack.c.bf16 %v170_v33, %v169_v32  ;;  %v140_v41 = vld [vmem:[%s6010_s0 + $0x38] sm:$0xff]  ;;  %v187_v42 = vld [vmem:[%s6010_s0 + $0x1b0] sm:$0xff]  ;;  %v157_v47 = vld [vmem:[%s6010_s0 + $0xc0] sm:$0xff] }
   0xb   :  { %3278 = vmatpush3.bf16.msra.mxu1 %v3277_v26  ;;  %v188_v43 = vld [vmem:[%s6010_s0 + $0x1b8] sm:$0xff]  ;;  %v171_v45 = vld [vmem:[%s6010_s0 + $0x130] sm:$0xff]  ;;  %v158_v48 = vld [vmem:[%s6010_s0 + $0xc8] sm:$0xff]  ;;  %v3253_v49 = vpack.c.bf16 %v140_v41, %v139_v38 }
   0xc   :  { %3280 = vmatprep.subr.bf16.mxu1 %v3279_v35  ;;  %v3283_v44 = vpack.c.bf16 %v188_v43, %v187_v42  ;;  %v172_v46 = vld [vmem:[%s6010_s0 + $0x138] sm:$0xff]  ;;  %v189_v50 = vld [vmem:[%s6010_s0 + $0x1c0] sm:$0xff]  ;;  %v190_v51 = vld [vmem:[%s6010_s0 + $0x1c8] sm:$0xff]  ;;  %v3255_v53 = vpack.c.bf16 %v158_v48, %v157_v47 }
   0xd   :  { %3250 = vmatpush3.bf16.msra.mxu0 %v3249_v34  ;;  %v3285_v52 = vpack.c.bf16 %v172_v46, %v171_v45  ;;  %v141_v54 = vld [vmem:[%s6010_s0 + $0x40] sm:$0xff]  ;;  %v142_v55 = vld [vmem:[%s6010_s0 + $0x48] sm:$0xff]  ;;  %v3287_v57 = vpack.c.bf16 %v190_v51, %v189_v50  ;;  %v159_v59 = vld [vmem:[%s6010_s0 + $0xd0] sm:$0xff] }
   0xe   :  { %3252 = vmatprep.subr.bf16.mxu0 %v3251_v40  ;;  %v173_v56 = vld [vmem:[%s6010_s0 + $0x140] sm:$0xff]  ;;  %v174_v58 = vld [vmem:[%s6010_s0 + $0x148] sm:$0xff]  ;;  %v160_v60 = vld [vmem:[%s6010_s0 + $0xd8] sm:$0xff]  ;;  %v3257_v63 = vpack.c.bf16 %v142_v55, %v141_v54 }
   0xf   :  { %3282 = vmatpush3.bf16.msra.mxu1 %v3281_v39  ;;  %v191_v61 = vld [vmem:[%s6010_s0 + $0x1d0] sm:$0xff]  ;;  %v192_v62 = vld [vmem:[%s6010_s0 + $0x1d8] sm:$0xff]  ;;  %v3289_v0 = vpack.c.bf16 %v174_v58, %v173_v56  ;;  %v3259_v1 = vpack.c.bf16 %v160_v60, %v159_v59  ;;  %v161_v7 = vld [vmem:[%s6010_s0 + $0xe0] sm:$0xff] }
  0x10   :  { %3284 = vmatprep.subr.bf16.mxu1 %v3283_v44  ;;  %v143_v2 = vld [vmem:[%s6010_s0 + $0x50] sm:$0xff]  ;;  %v144_v3 = vld [vmem:[%s6010_s0 + $0x58] sm:$0xff]  ;;  %v3291_v5 = vpack.c.bf16 %v192_v62, %v191_v61  ;;  %v162_v8 = vld [vmem:[%s6010_s0 + $0xe8] sm:$0xff] }
  0x11   :  { %3254 = vmatpush3.bf16.msra.mxu0 %v3253_v49  ;;  %v175_v4 = vld [vmem:[%s6010_s0 + $0x150] sm:$0xff]  ;;  %v176_v6 = vld [vmem:[%s6010_s0 + $0x158] sm:$0xff]  ;;  %v193_v9 = vld [vmem:[%s6010_s0 + $0x1e0] sm:$0xff]  ;;  %v3261_v11 = vpack.c.bf16 %v144_v3, %v143_v2  ;;  %v3263_v15 = vpack.c.bf16 %v162_v8, %v161_v7 }
  0x12   :  { %3256 = vmatprep.subr.bf16.mxu0 %v3255_v53  ;;  %v194_v10 = vld [vmem:[%s6010_s0 + $0x1e8] sm:$0xff]  ;;  %v145_v12 = vld [vmem:[%s6010_s0 + $0x60] sm:$0xff]  ;;  %v3293_v14 = vpack.c.bf16 %v176_v6, %v175_v4  ;;  %v163_v20 = vld [vmem:[%s6010_s0 + $0xf0] sm:$0xff] }
  0x13   :  { %3286 = vmatpush3.bf16.msra.mxu1 %v3285_v52  ;;  %v146_v13 = vld [vmem:[%s6010_s0 + $0x68] sm:$0xff]  ;;  %v177_v16 = vld [vmem:[%s6010_s0 + $0x160] sm:$0xff]  ;;  %v3295_v19 = vpack.c.bf16 %v194_v10, %v193_v9  ;;  %v164_v21 = vld [vmem:[%s6010_s0 + $0xf8] sm:$0xff] }
  0x14   :  { %3288 = vmatprep.subr.bf16.mxu1 %v3287_v57  ;;  %v178_v17 = vld [vmem:[%s6010_s0 + $0x168] sm:$0xff]  ;;  %v35_v22 = vld [vmem:[%s6011_s1 + $0x18] sm:$0xff]  ;;  %v195_v23 = vld [vmem:[%s6010_s0 + $0x1f0] sm:$0xff]  ;;  %v3265_v25 = vpack.c.bf16 %v146_v13, %v145_v12  ;;  %v3267_v27 = vpack.c.bf16 %v164_v21, %v163_v20 }
  0x15   :  { %3258 = vmatpush3.bf16.msra.mxu0 %v3257_v63  ;;  %v33_v18 = vld [vmem:[%s6011_s1 + $0x8] sm:$0xff]  ;;  %v196_v24 = vld [vmem:[%s6010_s0 + $0x1f8] sm:$0xff]  ;;  %568 = vmatprep.mubr.f32.mxu1 %v35_v22  ;;  %v3297_v26 = vpack.c.bf16 %v178_v17, %v177_v16  ;;  %v147_v28 = vld [vmem:[%s6010_s0 + $0x70] sm:$0xff] }
  0x16   :  { %3260 = vmatprep.subr.bf16.mxu0 %v3259_v1  ;;  %478 = vmatprep.mubr.f32.mxu0 %v33_v18  ;;  %v148_v29 = vld [vmem:[%s6010_s0 + $0x78] sm:$0xff]  ;;  %v179_v30 = vld [vmem:[%s6010_s0 + $0x170] sm:$0xff]  ;;  %v3299_v31 = vpack.c.bf16 %v196_v24, %v195_v23  ;;  %v213_v33 = vld [vmem:[%s6010_s0 + $0x280] sm:$0xff] }
  0x17   :  { %3290 = vmatpush3.bf16.msra.mxu1 %v3289_v0  ;;  %v180_v32 = vld [vmem:[%s6010_s0 + $0x178] sm:$0xff]  ;;  %v214_v34 = vld [vmem:[%s6010_s0 + $0x288] sm:$0xff]  ;;  %v245_v35 = vld [vmem:[%s6010_s0 + $0x380] sm:$0xff]  ;;  %v3269_v37 = vpack.c.bf16 %v148_v29, %v147_v28 }
  0x18   :  { %3292 = vmatprep.subr.bf16.mxu1 %v3291_v5  ;;  %v246_v36 = vld [vmem:[%s6010_s0 + $0x388] sm:$0xff]  ;;  %v3301_v38 = vpack.c.bf16 %v180_v32, %v179_v30  ;;  %v3303_v39 = vpack.c.bf16 %v214_v34, %v213_v33  ;;  %v197_v40 = vld [vmem:[%s6010_s0 + $0x200] sm:$0xff]  ;;  %v215_v45 = vld [vmem:[%s6010_s0 + $0x290] sm:$0xff] }
  0x19   :  { %3262 = vmatpush3.bf16.msra.mxu0 %v3261_v11  ;;  %v198_v41 = vld [vmem:[%s6010_s0 + $0x208] sm:$0xff]  ;;  %v229_v42 = vld [vmem:[%s6010_s0 + $0x300] sm:$0xff]  ;;  %v3335_v43 = vpack.c.bf16 %v246_v36, %v245_v35  ;;  %v216_v46 = vld [vmem:[%s6010_s0 + $0x298] sm:$0xff] }
  0x1a   :  { %3264 = vmatprep.subr.bf16.mxu0 %v3263_v15  ;;  %v230_v44 = vld [vmem:[%s6010_s0 + $0x308] sm:$0xff]  ;;  %v247_v47 = vld [vmem:[%s6010_s0 + $0x390] sm:$0xff]  ;;  %v248_v48 = vld [vmem:[%s6010_s0 + $0x398] sm:$0xff]  ;;  %v3305_v50 = vpack.c.bf16 %v198_v41, %v197_v40  ;;  %v3307_v53 = vpack.c.bf16 %v216_v46, %v215_v45 }
  0x1b   :  { %3294 = vmatpush3.bf16.msra.mxu1 %v3293_v14  ;;  %v32_v49 = vld [vmem:[%s6011_s1] sm:$0xff]  ;;  %v34_v51 = vld [vmem:[%s6011_s1 + $0x10] sm:$0xff]  ;;  %v3337_v52 = vpack.c.bf16 %v230_v44, %v229_v42  ;;  %v200_v55 = vld [vmem:[%s6010_s0 + $0x218] sm:$0xff]  ;;  %v3339_v57 = vpack.c.bf16 %v248_v48, %v247_v47 }
  0x1c   :  { %3296 = vmatprep.subr.bf16.mxu1 %v3295_v19  ;;  %v199_v54 = vld [vmem:[%s6010_s0 + $0x210] sm:$0xff]  ;;  %v232_v58 = vld [vmem:[%s6010_s0 + $0x318] sm:$0xff]  ;;  %v217_v59 = vld [vmem:[%s6010_s0 + $0x2a0] sm:$0xff] }
  0x1d   :  { %3266 = vmatpush3.bf16.msra.mxu0 %v3265_v25  ;;  %v231_v56 = vld [vmem:[%s6010_s0 + $0x310] sm:$0xff]  ;;  %v218_v60 = vld [vmem:[%s6010_s0 + $0x2a8] sm:$0xff]  ;;  %v249_v61 = vld [vmem:[%s6010_s0 + $0x3a0] sm:$0xff]  ;;  %v3309_v0 = vpack.c.bf16 %v200_v55, %v199_v54 }
  0x1e   :  { %3268 = vmatprep.subr.bf16.mxu0 %v3267_v27  ;;  %v250_v62 = vld [vmem:[%s6010_s0 + $0x3a8] sm:$0xff]  ;;  %v201_v1 = vld [vmem:[%s6010_s0 + $0x220] sm:$0xff]  ;;  %v51_v3 = vld [vmem:[%s6011_s1 + $0x98] sm:$0xff]  ;;  %v3341_v4 = vpack.c.bf16 %v232_v58, %v231_v56  ;;  %v3311_v5 = vpack.c.bf16 %v218_v60, %v217_v59 }
  0x1f   :  { %3298 = vmatpush3.bf16.msra.mxu1 %v3297_v26  ;;  %v49_v63 = vld [vmem:[%s6011_s1 + $0x88] sm:$0xff]  ;;  %v48_v2 = vld [vmem:[%s6011_s1 + $0x80] sm:$0xff]  ;;  %v50_v8 = vld [vmem:[%s6011_s1 + $0x90] sm:$0xff]  ;;  %v3343_v9 = vpack.c.bf16 %v250_v62, %v249_v61 }
  0x20   :  { %3300 = vmatprep.subr.bf16.mxu1 %v3299_v31  ;;  %v202_v6 = vld [vmem:[%s6010_s0 + $0x228] sm:$0xff]  ;;  %v233_v7 = vld [vmem:[%s6010_s0 + $0x320] sm:$0xff]  ;;  %v219_v11 = vld [vmem:[%s6010_s0 + $0x2b0] sm:$0xff] }
  0x21   :  { %3270 = vmatpush3.bf16.msra.mxu0 %v3269_v37  ;;  %v234_v10 = vld [vmem:[%s6010_s0 + $0x328] sm:$0xff]  ;;  %v220_v12 = vld [vmem:[%s6010_s0 + $0x2b8] sm:$0xff]  ;;  %v251_v13 = vld [vmem:[%s6010_s0 + $0x3b0] sm:$0xff]  ;;  %v3313_v16 = vpack.c.bf16 %v202_v6, %v201_v1 }
  0x22   :  { %3304 = vmatprep.subr.bf16.mxu0 %v3303_v39  ;;  %v252_v14 = vld [vmem:[%s6010_s0 + $0x3b8] sm:$0xff]  ;;  %v65_v15 = vld [vmem:[%s6011_s1 + $0x108] sm:$0xff]  ;;  %v203_v17 = vld [vmem:[%s6010_s0 + $0x230] sm:$0xff]  ;;  %v3345_v20 = vpack.c.bf16 %v234_v10, %v233_v7  ;;  %v3315_v21 = vpack.c.bf16 %v220_v12, %v219_v11 }
  0x23   :  { %3302 = vmatpush3.bf16.msra.mxu1 %v3301_v38  ;;  %v64_v18 = vld [vmem:[%s6011_s1 + $0x100] sm:$0xff]  ;;  %v67_v19 = vld [vmem:[%s6011_s1 + $0x118] sm:$0xff]  ;;  %v235_v23 = vld [vmem:[%s6010_s0 + $0x330] sm:$0xff]  ;;  %v3347_v25 = vpack.c.bf16 %v252_v14, %v251_v13 }
  0x24   :  { %3336 = vmatprep.subr.bf16.mxu1 %v3335_v43  ;;  %479 = vmatmul.mubr.f32.vlgmr.msra.gmra.mrb[0].mxu0 %v32_v49  ;;  %v204_v22 = vld [vmem:[%s6010_s0 + $0x238] sm:$0xff]  ;;  %v66_v24 = vld [vmem:[%s6011_s1 + $0x110] sm:$0xff]  ;;  %v221_v27 = vld [vmem:[%s6010_s0 + $0x2c0] sm:$0xff] }
  0x25   :  { %3306 = vmatpush3.bf16.msra.mxu0 %v3305_v50  ;;  %483 = vmatprep.mubr.f32.mxu0 %v49_v63  ;;  %v236_v26 = vld [vmem:[%s6010_s0 + $0x338] sm:$0xff]  ;;  %v222_v28 = vld [vmem:[%s6010_s0 + $0x2c8] sm:$0xff]  ;;  %v253_v29 = vld [vmem:[%s6010_s0 + $0x3c0] sm:$0xff]  ;;  %v3317_v32 = vpack.c.bf16 %v204_v22, %v203_v17 }
  0x26   :  { %569 = vmatmul.mubr.f32.vlgmr.msra.gmra.mrb[0].mxu1 %v34_v51  ;;  %3308 = vmatprep.subr.bf16.mxu0 %v3307_v53  ;;  %v254_v30 = vld [vmem:[%s6010_s0 + $0x3c8] sm:$0xff]  ;;  %v205_v33 = vld [vmem:[%s6010_s0 + $0x240] sm:$0xff]  ;;  %v83_v35 = vld [vmem:[%s6011_s1 + $0x198] sm:$0xff]  ;;  %v3349_v36 = vpack.c.bf16 %v236_v26, %v235_v23  ;;  %v3319_v37 = vpack.c.bf16 %v222_v28, %v221_v27 }
  0x27   :  { %3338 = vmatpush3.bf16.msra.mxu1 %v3337_v52  ;;  %573 = vmatprep.mubr.f32.mxu1 %v51_v3  ;;  %v81_v31 = vld [vmem:[%s6011_s1 + $0x188] sm:$0xff]  ;;  %v80_v34 = vld [vmem:[%s6011_s1 + $0x180] sm:$0xff]  ;;  %v82_v40 = vld [vmem:[%s6011_s1 + $0x190] sm:$0xff]  ;;  %v3351_v41 = vpack.c.bf16 %v254_v30, %v253_v29 }
  0x28   :  { %3340 = vmatprep.subr.bf16.mxu1 %v3339_v57  ;;  %484 = vmatmul.mubr.f32.gmra.mrb[2].mxu0 %v48_v2  ;;  %v206_v38 = vld [vmem:[%s6010_s0 + $0x248] sm:$0xff]  ;;  %v237_v39 = vld [vmem:[%s6010_s0 + $0x340] sm:$0xff]  ;;  %v223_v43 = vld [vmem:[%s6010_s0 + $0x2d0] sm:$0xff] }
  0x29   :  { %3310 = vmatpush3.bf16.msra.mxu0 %v3309_v0  ;;  %488 = vmatprep.mubr.f32.mxu0 %v65_v15  ;;  %v238_v42 = vld [vmem:[%s6010_s0 + $0x348] sm:$0xff]  ;;  %v224_v44 = vld [vmem:[%s6010_s0 + $0x2d8] sm:$0xff]  ;;  %v255_v45 = vld [vmem:[%s6010_s0 + $0x3d0] sm:$0xff]  ;;  %v3321_v48 = vpack.c.bf16 %v206_v38, %v205_v33 }
  0x2a   :  { %574 = vmatmul.mubr.f32.gmra.mrb[2].mxu1 %v50_v8  ;;  %3312 = vmatprep.subr.bf16.mxu0 %v3311_v5  ;;  %v256_v46 = vld [vmem:[%s6010_s0 + $0x3d8] sm:$0xff]  ;;  %v97_v47 = vld [vmem:[%s6011_s1 + $0x208] sm:$0xf]  ;;  %v207_v49 = vld [vmem:[%s6010_s0 + $0x250] sm:$0xff]  ;;  %v3353_v52 = vpack.c.bf16 %v238_v42, %v237_v39  ;;  %v3323_v53 = vpack.c.bf16 %v224_v44, %v223_v43 }
  0x2b   :  { %3342 = vmatpush3.bf16.msra.mxu1 %v3341_v4  ;;  %578 = vmatprep.mubr.f32.mxu1 %v67_v19  ;;  %v96_v50 = vld [vmem:[%s6011_s1 + $0x200] sm:$0xf]  ;;  %v99_v51 = vld [vmem:[%s6011_s1 + $0x218] sm:$0xf]  ;;  %v239_v55 = vld [vmem:[%s6010_s0 + $0x350] sm:$0xff]  ;;  %v3355_v57 = vpack.c.bf16 %v256_v46, %v255_v45 }
  0x2c   :  { %3344 = vmatprep.subr.bf16.mxu1 %v3343_v9  ;;  %489 = vmatmul.mubr.f32.gmra.mrb[4].mxu0 %v64_v18  ;;  %v208_v54 = vld [vmem:[%s6010_s0 + $0x258] sm:$0xff]  ;;  %v98_v56 = vld [vmem:[%s6011_s1 + $0x210] sm:$0xf]  ;;  %v225_v59 = vld [vmem:[%s6010_s0 + $0x2e0] sm:$0xff] }
  0x2d   :  { %3314 = vmatpush3.bf16.msra.mxu0 %v3313_v16  ;;  %493 = vmatprep.mubr.f32.mxu0 %v81_v31  ;;  %v240_v58 = vld [vmem:[%s6010_s0 + $0x358] sm:$0xff]  ;;  %v226_v60 = vld [vmem:[%s6010_s0 + $0x2e8] sm:$0xff]  ;;  %v257_v61 = vld [vmem:[%s6010_s0 + $0x3e0] sm:$0xff]  ;;  %v3325_v0 = vpack.c.bf16 %v208_v54, %v207_v49 }
  0x2e   :  { %579 = vmatmul.mubr.f32.gmra.mrb[4].mxu1 %v66_v24  ;;  %3316 = vmatprep.subr.bf16.mxu0 %v3315_v21  ;;  %v258_v62 = vld [vmem:[%s6010_s0 + $0x3e8] sm:$0xff]  ;;  %v39_v1 = vld [vmem:[%s6011_s1 + $0x38] sm:$0xff]  ;;  %v3357_v2 = vpack.c.bf16 %v240_v58, %v239_v55  ;;  %v3327_v3 = vpack.c.bf16 %v226_v60, %v225_v59  ;;  %v209_v4 = vld [vmem:[%s6010_s0 + $0x260] sm:$0xff] }
  0x2f   :  { %3346 = vmatpush3.bf16.msra.mxu1 %v3345_v20  ;;  %583 = vmatprep.mubr.f32.mxu1 %v83_v35  ;;  %v37_v63 = vld [vmem:[%s6011_s1 + $0x28] sm:$0xff]  ;;  %v241_v6 = vld [vmem:[%s6010_s0 + $0x360] sm:$0xff]  ;;  %v3359_v7 = vpack.c.bf16 %v258_v62, %v257_v61  ;;  %v227_v9 = vld [vmem:[%s6010_s0 + $0x2f0] sm:$0xff] }
  0x30   :  { %3348 = vmatprep.subr.bf16.mxu1 %v3347_v25  ;;  %494 = vmatmul.mubr.f32.gmra.mrb[6].mxu0 %v80_v34  ;;  %v210_v5 = vld [vmem:[%s6010_s0 + $0x268] sm:$0xff]  ;;  %v228_v10 = vld [vmem:[%s6010_s0 + $0x2f8] sm:$0xff]  ;;  %v259_v11 = vld [vmem:[%s6010_s0 + $0x3f0] sm:$0xff] }
  0x31   :  { %3318 = vmatpush3.bf16.msra.mxu0 %v3317_v32  ;;  %498 = vmatprep.mubr.f32.mxu0 %v97_v47  ;;  %v242_v8 = vld [vmem:[%s6010_s0 + $0x368] sm:$0xff]  ;;  %v260_v12 = vld [vmem:[%s6010_s0 + $0x3f8] sm:$0xff]  ;;  %v3329_v13 = vpack.c.bf16 %v210_v5, %v209_v4  ;;  %v3331_v15 = vpack.c.bf16 %v228_v10, %v227_v9  ;;  %v211_v16 = vld [vmem:[%s6010_s0 + $0x270] sm:$0xff] }
  0x32   :  { %584 = vmatmul.mubr.f32.gmra.mrb[6].mxu1 %v82_v40  ;;  %3320 = vmatprep.subr.bf16.mxu0 %v3319_v37  ;;  %v3361_v14 = vpack.c.bf16 %v242_v8, %v241_v6  ;;  %v212_v17 = vld [vmem:[%s6010_s0 + $0x278] sm:$0xff]  ;;  %v243_v18 = vld [vmem:[%s6010_s0 + $0x370] sm:$0xff]  ;;  %v3363_v19 = vpack.c.bf16 %v260_v12, %v259_v11  ;;  %v277_v21 = vld [vmem:[%s6010_s0 + $0x480] sm:$0xff] }
  0x33   :  { %3350 = vmatpush3.bf16.msra.mxu1 %v3349_v36  ;;  %588 = vmatprep.mubr.f32.mxu1 %v99_v51  ;;  %v244_v20 = vld [vmem:[%s6010_s0 + $0x378] sm:$0xff]  ;;  %v278_v22 = vld [vmem:[%s6010_s0 + $0x488] sm:$0xff]  ;;  %v309_v23 = vld [vmem:[%s6010_s0 + $0x580] sm:$0xff]  ;;  %v3333_v25 = vpack.c.bf16 %v212_v17, %v211_v16 }
  0x34   :  { %3352 = vmatprep.subr.bf16.mxu1 %v3351_v41  ;;  %499 = vmatmul.mubr.f32.gmra.mrb[8].mxu0 %v96_v50  ;;  %v310_v24 = vld [vmem:[%s6010_s0 + $0x588] sm:$0xff]  ;;  %v3365_v26 = vpack.c.bf16 %v244_v20, %v243_v18  ;;  %v3367_v27 = vpack.c.bf16 %v278_v22, %v277_v21  ;;  %v261_v28 = vld [vmem:[%s6010_s0 + $0x400] sm:$0xff]  ;;  %v279_v34 = vld [vmem:[%s6010_s0 + $0x490] sm:$0xff] }
  0x35   :  { %3322 = vmatpush3.bf16.msra.mxu0 %v3321_v48  ;;  %658 = vmatprep.mubr.f32.mxu0 %v37_v63  ;;  %v262_v29 = vld [vmem:[%s6010_s0 + $0x408] sm:$0xff]  ;;  %v3399_v30 = vpack.c.bf16 %v310_v24, %v309_v23  ;;  %v293_v31 = vld [vmem:[%s6010_s0 + $0x500] sm:$0xff]  ;;  %v280_v35 = vld [vmem:[%s6010_s0 + $0x498] sm:$0xff] }
  0x36   :  { %589 = vmatmul.mubr.f32.gmra.mrb[8].mxu1 %v98_v56  ;;  %3324 = vmatprep.subr.bf16.mxu0 %v3323_v53  ;;  %v294_v32 = vld [vmem:[%s6010_s0 + $0x508] sm:$0xff]  ;;  %v36_v33 = vld [vmem:[%s6011_s1 + $0x20] sm:$0xff]  ;;  %v3369_v36 = vpack.c.bf16 %v262_v29, %v261_v28  ;;  %v38_v37 = vld [vmem:[%s6011_s1 + $0x30] sm:$0xff]  ;;  %v3371_v45 = vpack.c.bf16 %v280_v35, %v279_v34 }
  0x37   :  { %3354 = vmatpush3.bf16.msra.mxu1 %v3353_v52  ;;  %748 = vmatprep.mubr.f32.mxu1 %v39_v1  ;;  %v311_v38 = vld [vmem:[%s6010_s0 + $0x590] sm:$0xff]  ;;  %v312_v39 = vld [vmem:[%s6010_s0 + $0x598] sm:$0xff]  ;;  %v3401_v40 = vpack.c.bf16 %v294_v32, %v293_v31  ;;  %v53_v41 = vld [vmem:[%s6011_s1 + $0xa8] sm:$0xff] }
  0x38   :  { %3356 = vmatprep.subr.bf16.mxu1 %v3355_v57  ;;  %v263_v42 = vld [vmem:[%s6010_s0 + $0x410] sm:$0xff]  ;;  %v264_v43 = vld [vmem:[%s6010_s0 + $0x418] sm:$0xff]  ;;  %v52_v44 = vld [vmem:[%s6011_s1 + $0xa0] sm:$0xff]  ;;  %v3403_v49 = vpack.c.bf16 %v312_v39, %v311_v38 }
  0x39   :  { %3326 = vmatpush3.bf16.msra.mxu0 %v3325_v0  ;;  %v295_v46 = vld [vmem:[%s6010_s0 + $0x510] sm:$0xff]  ;;  %v296_v47 = vld [vmem:[%s6010_s0 + $0x518] sm:$0xff]  ;;  %v281_v50 = vld [vmem:[%s6010_s0 + $0x4a0] sm:$0xff]  ;;  %v3373_v52 = vpack.c.bf16 %v264_v43, %v263_v42 }
  0x3a   :  { %3328 = vmatprep.subr.bf16.mxu0 %v3327_v3  ;;  %v55_v48 = vld [vmem:[%s6011_s1 + $0xb8] sm:$0xff]  ;;  %v282_v51 = vld [vmem:[%s6010_s0 + $0x4a8] sm:$0xff]  ;;  %v54_v53 = vld [vmem:[%s6011_s1 + $0xb0] sm:$0xff]  ;;  %v3405_v56 = vpack.c.bf16 %v296_v47, %v295_v46 }
  0x3b   :  { %3358 = vmatpush3.bf16.msra.mxu1 %v3357_v2  ;;  %v313_v54 = vld [vmem:[%s6010_s0 + $0x5a0] sm:$0xff]  ;;  %v314_v55 = vld [vmem:[%s6010_s0 + $0x5a8] sm:$0xff]  ;;  %v3375_v61 = vpack.c.bf16 %v282_v51, %v281_v50  ;;  %v71_v0 = vld [vmem:[%s6011_s1 + $0x138] sm:$0xff] }
  0x3c   :  { %3360 = vmatprep.subr.bf16.mxu1 %v3359_v7  ;;  %v69_v57 = vld [vmem:[%s6011_s1 + $0x128] sm:$0xff]  ;;  %v265_v58 = vld [vmem:[%s6010_s0 + $0x420] sm:$0xff]  ;;  %v3407_v1 = vpack.c.bf16 %v314_v55, %v313_v54  ;;  %v283_v2 = vld [vmem:[%s6010_s0 + $0x4b0] sm:$0xff] }
  0x3d   :  { %3330 = vmatpush3.bf16.msra.mxu0 %v3329_v13  ;;  %v266_v59 = vld [vmem:[%s6010_s0 + $0x428] sm:$0xff]  ;;  %v68_v60 = vld [vmem:[%s6011_s1 + $0x120] sm:$0xff]  ;;  %v284_v3 = vld [vmem:[%s6010_s0 + $0x4b8] sm:$0xff] }
  0x3e   :  { %3332 = vmatprep.subr.bf16.mxu0 %v3331_v15  ;;  %v297_v62 = vld [vmem:[%s6010_s0 + $0x520] sm:$0xff]  ;;  %v298_v63 = vld [vmem:[%s6010_s0 + $0x528] sm:$0xff]  ;;  %v3377_v4 = vpack.c.bf16 %v266_v59, %v265_v58  ;;  %v70_v5 = vld [vmem:[%s6011_s1 + $0x130] sm:$0xff]  ;;  %v3379_v13 = vpack.c.bf16 %v284_v3, %v283_v2 }
  0x3f   :  { %3362 = vmatpush3.bf16.msra.mxu1 %v3361_v14  ;;  %v315_v6 = vld [vmem:[%s6010_s0 + $0x5b0] sm:$0xff]  ;;  %v316_v7 = vld [vmem:[%s6010_s0 + $0x5b8] sm:$0xff]  ;;  %v3409_v8 = vpack.c.bf16 %v298_v63, %v297_v62  ;;  %v85_v9 = vld [vmem:[%s6011_s1 + $0x1a8] sm:$0xff] }
  0x40   :  { %3364 = vmatprep.subr.bf16.mxu1 %v3363_v19  ;;  %v267_v10 = vld [vmem:[%s6010_s0 + $0x430] sm:$0xff]  ;;  %v268_v11 = vld [vmem:[%s6010_s0 + $0x438] sm:$0xff]  ;;  %v84_v12 = vld [vmem:[%s6011_s1 + $0x1a0] sm:$0xff]  ;;  %v3411_v17 = vpack.c.bf16 %v316_v7, %v315_v6 }
  0x41   :  { %3334 = vmatpush3.bf16.msra.mxu0 %v3333_v25  ;;  %v87_v14 = vld [vmem:[%s6011_s1 + $0x1b8] sm:$0xff]  ;;  %v299_v15 = vld [vmem:[%s6010_s0 + $0x530] sm:$0xff]  ;;  %v285_v19 = vld [vmem:[%s6010_s0 + $0x4c0] sm:$0xff]  ;;  %v3381_v21 = vpack.c.bf16 %v268_v11, %v267_v10 }
  0x42   :  { %3368 = vmatprep.subr.bf16.mxu0 %v3367_v27  ;;  %v300_v16 = vld [vmem:[%s6010_s0 + $0x538] sm:$0xff]  ;;  %v86_v18 = vld [vmem:[%s6011_s1 + $0x1b0] sm:$0xff]  ;;  %v286_v20 = vld [vmem:[%s6010_s0 + $0x4c8] sm:$0xff] }
  0x43   :  { %3366 = vmatpush3.bf16.msra.mxu1 %v3365_v26  ;;  %v101_v22 = vld [vmem:[%s6011_s1 + $0x228] sm:$0xf]  ;;  %v317_v23 = vld [vmem:[%s6010_s0 + $0x5c0] sm:$0xff]  ;;  %v3413_v25 = vpack.c.bf16 %v300_v16, %v299_v15  ;;  %v3383_v29 = vpack.c.bf16 %v286_v20, %v285_v19  ;;  %v287_v31 = vld [vmem:[%s6010_s0 + $0x4d0] sm:$0xff] }
  0x44   :  { %3400 = vmatprep.subr.bf16.mxu1 %v3399_v30  ;;  %659 = vmatmul.mubr.f32.vlgmr.msra.gmra.mrb[10].mxu0 %v36_v33  ;;  %v318_v24 = vld [vmem:[%s6010_s0 + $0x5c8] sm:$0xff]  ;;  %v269_v26 = vld [vmem:[%s6010_s0 + $0x440] sm:$0xff]  ;;  %v288_v32 = vld [vmem:[%s6010_s0 + $0x4d8] sm:$0xff] }
  0x45   :  { %3370 = vmatpush3.bf16.msra.mxu0 %v3369_v36  ;;  %663 = vmatprep.mubr.f32.mxu0 %v53_v41  ;;  %v270_v27 = vld [vmem:[%s6010_s0 + $0x448] sm:$0xff]  ;;  %v301_v28 = vld [vmem:[%s6010_s0 + $0x540] sm:$0xff]  ;;  %v103_v33 = vld [vmem:[%s6011_s1 + $0x238] sm:$0xf]  ;;  %v3415_v34 = vpack.c.bf16 %v318_v24, %v317_v23  ;;  %v3387_v41 = vpack.c.bf16 %v288_v32, %v287_v31 }
  0x46   :  { %749 = vmatmul.mubr.f32.vlgmr.msra.gmra.mrb[10].mxu1 %v38_v37  ;;  %3372 = vmatprep.subr.bf16.mxu0 %v3371_v45  ;;  %v302_v30 = vld [vmem:[%s6010_s0 + $0x548] sm:$0xff]  ;;  %v319_v35 = vld [vmem:[%s6010_s0 + $0x5d0] sm:$0xff]  ;;  %v320_v36 = vld [vmem:[%s6010_s0 + $0x5d8] sm:$0xff]  ;;  %v3385_v38 = vpack.c.bf16 %v270_v27, %v269_v26 }
  0x47   :  { %3402 = vmatpush3.bf16.msra.mxu1 %v3401_v40  ;;  %753 = vmatprep.mubr.f32.mxu1 %v55_v48  ;;  %v100_v37 = vld [vmem:[%s6011_s1 + $0x220] sm:$0xf]  ;;  %v102_v39 = vld [vmem:[%s6011_s1 + $0x230] sm:$0xf]  ;;  %v3417_v40 = vpack.c.bf16 %v302_v30, %v301_v28  ;;  %v272_v43 = vld [vmem:[%s6010_s0 + $0x458] sm:$0xff]  ;;  %v3419_v45 = vpack.c.bf16 %v320_v36, %v319_v35 }
  0x48   :  { %664 = vmatmul.mubr.f32.gmra.mrb[12].mxu0 %v52_v44  ;;  %3404 = vmatprep.subr.bf16.mxu1 %v3403_v49  ;;  %v271_v42 = vld [vmem:[%s6010_s0 + $0x450] sm:$0xff]  ;;  %v304_v46 = vld [vmem:[%s6010_s0 + $0x558] sm:$0xff]  ;;  %v289_v47 = vld [vmem:[%s6010_s0 + $0x4e0] sm:$0xff] }
  0x49   :  { %3374 = vmatpush3.bf16.msra.mxu0 %v3373_v52  ;;  %668 = vmatprep.mubr.f32.mxu0 %v69_v57  ;;  %v303_v44 = vld [vmem:[%s6010_s0 + $0x550] sm:$0xff]  ;;  %v290_v48 = vld [vmem:[%s6010_s0 + $0x4e8] sm:$0xff]  ;;  %v321_v49 = vld [vmem:[%s6010_s0 + $0x5e0] sm:$0xff]  ;;  %v3389_v52 = vpack.c.bf16 %v272_v43, %v271_v42 }
  0x4a   :  { %754 = vmatmul.mubr.f32.gmra.mrb[12].mxu1 %v54_v53  ;;  %3376 = vmatprep.subr.bf16.mxu0 %v3375_v61  ;;  %v322_v50 = vld [vmem:[%s6010_s0 + $0x5e8] sm:$0xff]  ;;  %v43_v53 = vld [vmem:[%s6011_s1 + $0x58] sm:$0xff]  ;;  %v3421_v54 = vpack.c.bf16 %v304_v46, %v303_v44  ;;  %v3391_v55 = vpack.c.bf16 %v290_v48, %v289_v47  ;;  %v305_v58 = vld [vmem:[%s6010_s0 + $0x560] sm:$0xff] }
  0x4b   :  { %3406 = vmatpush3.bf16.msra.mxu1 %v3405_v56  ;;  %758 = vmatprep.mubr.f32.mxu1 %v71_v0  ;;  %v41_v51 = vld [vmem:[%s6011_s1 + $0x48] sm:$0xff]  ;;  %v273_v56 = vld [vmem:[%s6010_s0 + $0x460] sm:$0xff]  ;;  %v3423_v59 = vpack.c.bf16 %v322_v50, %v321_v49  ;;  %v291_v61 = vld [vmem:[%s6010_s0 + $0x4f0] sm:$0xff] }
  0x4c   :  { %669 = vmatmul.mubr.f32.gmra.mrb[14].mxu0 %v68_v60  ;;  %3408 = vmatprep.subr.bf16.mxu1 %v3407_v1  ;;  %v274_v57 = vld [vmem:[%s6010_s0 + $0x468] sm:$0xff]  ;;  %v292_v62 = vld [vmem:[%s6010_s0 + $0x4f8] sm:$0xff]  ;;  %v323_v63 = vld [vmem:[%s6010_s0 + $0x5f0] sm:$0xff] }
  0x4d   :  { %3378 = vmatpush3.bf16.msra.mxu0 %v3377_v4  ;;  %673 = vmatprep.mubr.f32.mxu0 %v85_v9  ;;  %v306_v60 = vld [vmem:[%s6010_s0 + $0x568] sm:$0xff]  ;;  %v324_v0 = vld [vmem:[%s6010_s0 + $0x5f8] sm:$0xff]  ;;  %v3393_v1 = vpack.c.bf16 %v274_v57, %v273_v56  ;;  %v3395_v3 = vpack.c.bf16 %v292_v62, %v291_v61  ;;  %v275_v4 = vld [vmem:[%s6010_s0 + $0x470] sm:$0xff] }
  0x4e   :  { %759 = vmatmul.mubr.f32.gmra.mrb[14].mxu1 %v70_v5  ;;  %3380 = vmatprep.subr.bf16.mxu0 %v3379_v13  ;;  %v3425_v2 = vpack.c.bf16 %v306_v60, %v305_v58  ;;  %v276_v5 = vld [vmem:[%s6010_s0 + $0x478] sm:$0xff]  ;;  %v307_v6 = vld [vmem:[%s6010_s0 + $0x570] sm:$0xff]  ;;  %v3427_v7 = vpack.c.bf16 %v324_v0, %v323_v63  ;;  %v341_v9 = vld [vmem:[%s6010_s0 + $0x680] sm:$0xff] }
  0x4f   :  { %3410 = vmatpush3.bf16.msra.mxu1 %v3409_v8  ;;  %763 = vmatprep.mubr.f32.mxu1 %v87_v14  ;;  %v308_v8 = vld [vmem:[%s6010_s0 + $0x578] sm:$0xff]  ;;  %v342_v10 = vld [vmem:[%s6010_s0 + $0x688] sm:$0xff]  ;;  %v373_v11 = vld [vmem:[%s6010_s0 + $0x780] sm:$0xff]  ;;  %v3397_v13 = vpack.c.bf16 %v276_v5, %v275_v4 }
  0x50   :  { %674 = vmatmul.mubr.f32.gmra.mrb[16].mxu0 %v84_v12  ;;  %3412 = vmatprep.subr.bf16.mxu1 %v3411_v17  ;;  %v374_v12 = vld [vmem:[%s6010_s0 + $0x788] sm:$0xff]  ;;  %v3429_v14 = vpack.c.bf16 %v308_v8, %v307_v6  ;;  %v3431_v15 = vpack.c.bf16 %v342_v10, %v341_v9  ;;  %v325_v16 = vld [vmem:[%s6010_s0 + $0x600] sm:$0xff]  ;;  %v344_v23 = vld [vmem:[%s6010_s0 + $0x698] sm:$0xff] }
  0x51   :  { %3382 = vmatpush3.bf16.msra.mxu0 %v3381_v21  ;;  %678 = vmatprep.mubr.f32.mxu0 %v101_v22  ;;  %v326_v17 = vld [vmem:[%s6010_s0 + $0x608] sm:$0xff]  ;;  %v357_v19 = vld [vmem:[%s6010_s0 + $0x700] sm:$0xff]  ;;  %v343_v22 = vld [vmem:[%s6010_s0 + $0x690] sm:$0xff] }
  0x52   :  { %764 = vmatmul.mubr.f32.gmra.mrb[16].mxu1 %v86_v18  ;;  %3384 = vmatprep.subr.bf16.mxu0 %v3383_v29  ;;  %v3463_v18 = vpack.c.bf16 %v374_v12, %v373_v11  ;;  %v358_v20 = vld [vmem:[%s6010_s0 + $0x708] sm:$0xff]  ;;  %v40_v21 = vld [vmem:[%s6011_s1 + $0x40] sm:$0xff]  ;;  %v3433_v24 = vpack.c.bf16 %v326_v17, %v325_v16  ;;  %v375_v26 = vld [vmem:[%s6010_s0 + $0x790] sm:$0xff] }
  0x53   :  { %3414 = vmatpush3.bf16.msra.mxu1 %v3413_v25  ;;  %768 = vmatprep.mubr.f32.mxu1 %v103_v33  ;;  %v42_v25 = vld [vmem:[%s6011_s1 + $0x50] sm:$0xff]  ;;  %v376_v27 = vld [vmem:[%s6010_s0 + $0x798] sm:$0xff]  ;;  %v3465_v28 = vpack.c.bf16 %v358_v20, %v357_v19  ;;  %v57_v29 = vld [vmem:[%s6011_s1 + $0xc8] sm:$0xff]  ;;  %v3435_v33 = vpack.c.bf16 %v344_v23, %v343_v22 }
  0x54   :  { %679 = vmatmul.mubr.f32.gmra.mrb[18].mxu0 %v100_v37  ;;  %3416 = vmatprep.subr.bf16.mxu1 %v3415_v34  ;;  %v327_v30 = vld [vmem:[%s6010_s0 + $0x610] sm:$0xff]  ;;  %v328_v31 = vld [vmem:[%s6010_s0 + $0x618] sm:$0xff]  ;;  %v56_v32 = vld [vmem:[%s6011_s1 + $0xc0] sm:$0xff]  ;;  %v3467_v37 = vpack.c.bf16 %v376_v27, %v375_v26 }
  0x55   :  { %3386 = vmatpush3.bf16.msra.mxu0 %v3385_v38  ;;  %838 = vmatprep.mubr.f32.mxu0 %v41_v51  ;;  %v359_v34 = vld [vmem:[%s6010_s0 + $0x710] sm:$0xff]  ;;  %v360_v35 = vld [vmem:[%s6010_s0 + $0x718] sm:$0xff]  ;;  %v345_v38 = vld [vmem:[%s6010_s0 + $0x6a0] sm:$0xff] }
  0x56   :  { %769 = vmatmul.mubr.f32.gmra.mrb[18].mxu1 %v102_v39  ;;  %3388 = vmatprep.subr.bf16.mxu0 %v3387_v41  ;;  %v59_v36 = vld [vmem:[%s6011_s1 + $0xd8] sm:$0xff]  ;;  %v346_v39 = vld [vmem:[%s6010_s0 + $0x6a8] sm:$0xff]  ;;  %v58_v41 = vld [vmem:[%s6011_s1 + $0xd0] sm:$0xff]  ;;  %v3469_v44 = vpack.c.bf16 %v360_v35, %v359_v34 }
  0x57   :  { %3418 = vmatpush3.bf16.msra.mxu1 %v3417_v40  ;;  %928 = vmatprep.mubr.f32.mxu1 %v43_v53  ;;  %v3437_v40 = vpack.c.bf16 %v328_v31, %v327_v30  ;;  %v377_v42 = vld [vmem:[%s6010_s0 + $0x7a0] sm:$0xff]  ;;  %v378_v43 = vld [vmem:[%s6010_s0 + $0x7a8] sm:$0xff]  ;;  %v3439_v49 = vpack.c.bf16 %v346_v39, %v345_v38  ;;  %v74_v57 = vld [vmem:[%s6011_s1 + $0x150] sm:$0xff] }
  0x58   :  { %3420 = vmatprep.subr.bf16.mxu1 %v3419_v45  ;;  %v73_v45 = vld [vmem:[%s6011_s1 + $0x148] sm:$0xff]  ;;  %v329_v46 = vld [vmem:[%s6010_s0 + $0x620] sm:$0xff]  ;;  %v3471_v53 = vpack.c.bf16 %v378_v43, %v377_v42  ;;  %v379_v58 = vld [vmem:[%s6010_s0 + $0x7b0] sm:$0xff] }
  0x59   :  { %3390 = vmatpush3.bf16.msra.mxu0 %v3389_v52  ;;  %v330_v47 = vld [vmem:[%s6010_s0 + $0x628] sm:$0xff]  ;;  %v72_v48 = vld [vmem:[%s6011_s1 + $0x140] sm:$0xff]  ;;  %v75_v52 = vld [vmem:[%s6011_s1 + $0x158] sm:$0xff] }
  0x5a   :  { %3392 = vmatprep.subr.bf16.mxu0 %v3391_v55  ;;  %v361_v50 = vld [vmem:[%s6010_s0 + $0x720] sm:$0xff]  ;;  %v362_v51 = vld [vmem:[%s6010_s0 + $0x728] sm:$0xff]  ;;  %v348_v55 = vld [vmem:[%s6010_s0 + $0x6b8] sm:$0xff]  ;;  %v3441_v56 = vpack.c.bf16 %v330_v47, %v329_v46 }
  0x5b   :  { %3422 = vmatpush3.bf16.msra.mxu1 %v3421_v54  ;;  %v347_v54 = vld [vmem:[%s6010_s0 + $0x6b0] sm:$0xff]  ;;  %v3473_v60 = vpack.c.bf16 %v362_v51, %v361_v50  ;;  %v89_v61 = vld [vmem:[%s6011_s1 + $0x1c8] sm:$0xff]  ;;  %v332_v63 = vld [vmem:[%s6010_s0 + $0x638] sm:$0xff] }
  0x5c   :  { %3424 = vmatprep.subr.bf16.mxu1 %v3423_v59  ;;  %v380_v59 = vld [vmem:[%s6010_s0 + $0x7b8] sm:$0xff]  ;;  %v331_v62 = vld [vmem:[%s6010_s0 + $0x630] sm:$0xff]  ;;  %v88_v0 = vld [vmem:[%s6011_s1 + $0x1c0] sm:$0xff] }
  0x5d   :  { %3394 = vmatpush3.bf16.msra.mxu0 %v3393_v1  ;;  %v3443_v1 = vpack.c.bf16 %v348_v55, %v347_v54  ;;  %v364_v4 = vld [vmem:[%s6010_s0 + $0x738] sm:$0xff]  ;;  %v3475_v5 = vpack.c.bf16 %v380_v59, %v379_v58  ;;  %v90_v6 = vld [vmem:[%s6011_s1 + $0x1d0] sm:$0xff]  ;;  %v350_v8 = vld [vmem:[%s6010_s0 + $0x6c8] sm:$0xff]  ;;  %v3445_v9 = vpack.c.bf16 %v332_v63, %v331_v62 }
  0x5e   :  { %3396 = vmatprep.subr.bf16.mxu0 %v3395_v3  ;;  %v363_v3 = vld [vmem:[%s6010_s0 + $0x730] sm:$0xff]  ;;  %v105_v10 = vld [vmem:[%s6011_s1 + $0x248] sm:$0xf]  ;;  %v381_v11 = vld [vmem:[%s6010_s0 + $0x7c0] sm:$0xff] }
  0x5f   :  { %3426 = vmatpush3.bf16.msra.mxu1 %v3425_v2  ;;  %v91_v2 = vld [vmem:[%s6011_s1 + $0x1d8] sm:$0xff]  ;;  %v382_v12 = vld [vmem:[%s6010_s0 + $0x7c8] sm:$0xff]  ;;  %v365_v16 = vld [vmem:[%s6010_s0 + $0x740] sm:$0xff] }
  0x60   :  { %3428 = vmatprep.subr.bf16.mxu1 %v3427_v7  ;;  %v349_v7 = vld [vmem:[%s6010_s0 + $0x6c0] sm:$0xff]  ;;  %v351_v19 = vld [vmem:[%s6010_s0 + $0x6d0] sm:$0xff]  ;;  %v352_v20 = vld [vmem:[%s6010_s0 + $0x6d8] sm:$0xff]  ;;  %v3479_v22 = vpack.c.bf16 %v382_v12, %v381_v11 }
  0x61   :  { %3398 = vmatpush3.bf16.msra.mxu0 %v3397_v13  ;;  %v3477_v13 = vpack.c.bf16 %v364_v4, %v363_v3  ;;  %v3447_v17 = vpack.c.bf16 %v350_v8, %v349_v7  ;;  %v383_v23 = vld [vmem:[%s6010_s0 + $0x7d0] sm:$0xff]  ;;  %v336_v31 = vld [vmem:[%s6010_s0 + $0x658] sm:$0xff]  ;;  %v353_v35 = vld [vmem:[%s6010_s0 + $0x6e0] sm:$0xff] }
  0x62   :  { %3432 = vmatprep.subr.bf16.mxu0 %v3431_v15  ;;  %v334_v15 = vld [vmem:[%s6010_s0 + $0x648] sm:$0xff]  ;;  %v106_v27 = vld [vmem:[%s6011_s1 + $0x250] sm:$0xf]  ;;  %v368_v34 = vld [vmem:[%s6010_s0 + $0x758] sm:$0xff] }
  0x63   :  { %3430 = vmatpush3.bf16.msra.mxu1 %v3429_v14  ;;  %v333_v14 = vld [vmem:[%s6010_s0 + $0x640] sm:$0xff]  ;;  %v335_v30 = vld [vmem:[%s6010_s0 + $0x650] sm:$0xff]  ;;  %v386_v39 = vld [vmem:[%s6010_s0 + $0x7e8] sm:$0xff] }
  0x64   :  { %3464 = vmatprep.subr.bf16.mxu1 %v3463_v18  ;;  %839 = vmatmul.mubr.f32.vlgmr.msra.gmra.mrb[20].mxu0 %v40_v21  ;;  %v366_v18 = vld [vmem:[%s6010_s0 + $0x748] sm:$0xff]  ;;  %v107_v21 = vld [vmem:[%s6011_s1 + $0x258] sm:$0xf]  ;;  %v3449_v26 = vpack.c.bf16 %v334_v15, %v333_v14  ;;  %v385_v38 = vld [vmem:[%s6010_s0 + $0x7e0] sm:$0xff] }
  0x65   :  { %3434 = vmatpush3.bf16.msra.mxu0 %v3433_v24  ;;  %843 = vmatprep.mubr.f32.mxu0 %v57_v29  ;;  %v384_v24 = vld [vmem:[%s6010_s0 + $0x7d8] sm:$0xff]  ;;  %v3451_v29 = vpack.c.bf16 %v352_v20, %v351_v19  ;;  %v45_v42 = vld [vmem:[%s6011_s1 + $0x68] sm:$0xff]  ;;  %v369_v47 = vld [vmem:[%s6010_s0 + $0x760] sm:$0xff] }
  0x66   :  { %929 = vmatmul.mubr.f32.vlgmr.msra.gmra.mrb[20].mxu1 %v42_v25  ;;  %3436 = vmatprep.subr.bf16.mxu0 %v3435_v33  ;;  %v104_v25 = vld [vmem:[%s6011_s1 + $0x240] sm:$0xf]  ;;  %v3483_v33 = vpack.c.bf16 %v384_v24, %v383_v23  ;;  %v47_v43 = vld [vmem:[%s6011_s1 + $0x78] sm:$0xff]  ;;  %v338_v46 = vld [vmem:[%s6010_s0 + $0x668] sm:$0xff] }
  0x67   :  { %3466 = vmatpush3.bf16.msra.mxu1 %v3465_v28  ;;  %933 = vmatprep.mubr.f32.mxu1 %v59_v36  ;;  %v3481_v28 = vpack.c.bf16 %v366_v18, %v365_v16  ;;  %v354_v36 = vld [vmem:[%s6010_s0 + $0x6e8] sm:$0xff]  ;;  %v355_v50 = vld [vmem:[%s6010_s0 + $0x6f0] sm:$0xff]  ;;  %v356_v51 = vld [vmem:[%s6010_s0 + $0x6f8] sm:$0xff] }
  0x68   :  { %844 = vmatmul.mubr.f32.gmra.mrb[22].mxu0 %v56_v32  ;;  %3468 = vmatprep.subr.bf16.mxu1 %v3467_v37  ;;  %v367_v32 = vld [vmem:[%s6010_s0 + $0x750] sm:$0xff]  ;;  %v112_v37 = vld [vmem:[%s6012_s2] sm:$0xff]  ;;  %v388_v54 = vld [vmem:[%s6010_s0 + $0x7f8] sm:$0xff]  ;;  %v3459_v59 = vpack.c.bf16 %v356_v51, %v355_v50 }
  0x69   :  { %3438 = vmatpush3.bf16.msra.mxu0 %v3437_v40  ;;  %848 = vmatprep.mubr.f32.mxu0 %v73_v45  ;;  %v3453_v40 = vpack.c.bf16 %v336_v31, %v335_v30  ;;  %v3455_v45 = vpack.c.bf16 %v354_v36, %v353_v35  ;;  %v113_v55 = vld [vmem:[%s6012_s2 + $0x8] sm:$0xff]  ;;  %v372_v62 = vld [vmem:[%s6010_s0 + $0x778] sm:$0xff]  ;;  %v2279_v3 = vld [vmem:[%s6010_s0 + $0x980] sm:$0xff] }
  0x6a   :  { %934 = vmatmul.mubr.f32.gmra.mrb[22].mxu1 %v58_v41  ;;  %3440 = vmatprep.subr.bf16.mxu0 %v3439_v49  ;;  %v337_v41 = vld [vmem:[%s6010_s0 + $0x660] sm:$0xff]  ;;  %v3487_v49 = vpack.c.bf16 %v386_v39, %v385_v38  ;;  %v2280_v4 = vld [vmem:[%s6010_s0 + $0x988] sm:$0xff]  ;;  %v2249_v15 = vld [vmem:[%s6010_s0 + $0x890] sm:$0xff] }
  0x6b   :  { %3470 = vmatpush3.bf16.msra.mxu1 %v3469_v44  ;;  %938 = vmatprep.mubr.f32.mxu1 %v75_v52  ;;  %v3485_v44 = vpack.c.bf16 %v368_v34, %v367_v32  ;;  %v114_v52 = vld [vmem:[%s6012_s2 + $0x10] sm:$0xff]  ;;  %v2231_v8 = vld [vmem:[%s6010_s0 + $0x800] sm:$0xff]  ;;  %v2264_v12 = vld [vmem:[%s6010_s0 + $0x908] sm:$0xff] }
  0x6c   :  { %849 = vmatmul.mubr.f32.gmra.mrb[24].mxu0 %v72_v48  ;;  %3472 = vmatprep.subr.bf16.mxu1 %v3471_v53  ;;  %v370_v48 = vld [vmem:[%s6010_s0 + $0x768] sm:$0xff]  ;;  %v387_v53 = vld [vmem:[%s6010_s0 + $0x7f0] sm:$0xff]  ;;  %v2263_v11 = vld [vmem:[%s6010_s0 + $0x900] sm:$0xff] }
  0x6d   :  { %3442 = vmatpush3.bf16.msra.mxu0 %v3441_v56  ;;  %853 = vmatprep.mubr.f32.mxu0 %v89_v61  ;;  %v3457_v56 = vpack.c.bf16 %v338_v46, %v337_v41  ;;  %v3489_v58 = vpack.c.bf16 %v370_v48, %v369_v47  ;;  %v371_v61 = vld [vmem:[%s6010_s0 + $0x770] sm:$0xff]  ;;  %v3491_v63 = vpack.c.bf16 %v388_v54, %v387_v53  ;;  %v44_v14 = vld [vmem:[%s6011_s1 + $0x60] sm:$0xff]  ;;  %v2250_v16 = vld [vmem:[%s6010_s0 + $0x898] sm:$0xff] }
  0x6e   :  { %939 = vmatmul.mubr.f32.gmra.mrb[24].mxu1 %v74_v57  ;;  %3444 = vmatprep.subr.bf16.mxu0 %v3443_v1  ;;  %v339_v57 = vld [vmem:[%s6010_s0 + $0x670] sm:$0xff]  ;;  %v2248_v1 = vld [vmem:[%s6010_s0 + $0x888] sm:$0xff]  ;;  %v2282_v20 = vld [vmem:[%s6010_s0 + $0x998] sm:$0xff] }
  0x6f   :  { %3474 = vmatpush3.bf16.msra.mxu1 %v3473_v60  ;;  %943 = vmatprep.mubr.f32.mxu1 %v91_v2  ;;  %v340_v60 = vld [vmem:[%s6010_s0 + $0x678] sm:$0xff]  ;;  %v46_v18 = vld [vmem:[%s6011_s1 + $0x70] sm:$0xff]  ;;  %v2251_v31 = vld [vmem:[%s6010_s0 + $0x8a0] sm:$0xff] }
  0x70   :  { %854 = vmatmul.mubr.f32.gmra.mrb[26].mxu0 %v88_v0  ;;  %3476 = vmatprep.subr.bf16.mxu1 %v3475_v5  ;;  %v2247_v0 = vld [vmem:[%s6010_s0 + $0x880] sm:$0xff]  ;;  %v115_v2 = vld [vmem:[%s6012_s2 + $0x18] sm:$0xff]  ;;  %v3461_v5 = vpack.c.bf16 %v340_v60, %v339_v57  ;;  %v2281_v19 = vld [vmem:[%s6010_s0 + $0x990] sm:$0xff] }
  0x71   :  { %3446 = vmatpush3.bf16.msra.mxu0 %v3445_v9  ;;  %858 = vmatprep.mubr.f32.mxu0 %v105_v10  ;;  %v3495_v7 = vpack.c.bf16 %v2248_v1, %v2247_v0  ;;  %v2232_v9 = vld [vmem:[%s6010_s0 + $0x808] sm:$0xff]  ;;  %v3527_v10 = vpack.c.bf16 %v2280_v4, %v2279_v3  ;;  %v2233_v23 = vld [vmem:[%s6010_s0 + $0x810] sm:$0xff]  ;;  %v2234_v24 = vld [vmem:[%s6010_s0 + $0x818] sm:$0xff]  ;;  %v3531_v30 = vpack.c.bf16 %v2282_v20, %v2281_v19 }
  0x72   :  { %944 = vmatmul.mubr.f32.gmra.mrb[26].mxu1 %v90_v6  ;;  %3448 = vmatprep.subr.bf16.mxu0 %v3447_v17  ;;  %v3493_v6 = vpack.c.bf16 %v372_v62, %v371_v61  ;;  %v3497_v17 = vpack.c.bf16 %v2232_v9, %v2231_v8  ;;  %v2252_v32 = vld [vmem:[%s6010_s0 + $0x8a8] sm:$0xff]  ;;  %v62_v34 = vld [vmem:[%s6011_s1 + $0xf0] sm:$0xff]  ;;  %v2283_v35 = vld [vmem:[%s6010_s0 + $0x9a0] sm:$0xff] }
  0x73   :  { %3478 = vmatpush3.bf16.msra.mxu1 %v3477_v13  ;;  %948 = vmatprep.mubr.f32.mxu1 %v107_v21  ;;  %v116_v13 = vld [vmem:[%s6012_s2 + $0x20] sm:$0xf]  ;;  %v3529_v21 = vpack.c.bf16 %v2264_v12, %v2263_v11  ;;  %v2284_v36 = vld [vmem:[%s6010_s0 + $0x9a8] sm:$0xff]  ;;  %v2253_v47 = vld [vmem:[%s6010_s0 + $0x8b0] sm:$0xff] }
  0x74   :  { %859 = vmatmul.mubr.f32.gmra.mrb[28].mxu0 %v104_v25  ;;  %3480 = vmatprep.subr.bf16.mxu1 %v3479_v22  ;;  %v61_v22 = vld [vmem:[%s6011_s1 + $0xe8] sm:$0xff]  ;;  %v60_v25 = vld [vmem:[%s6011_s1 + $0xe0] sm:$0xff]  ;;  %v3535_v46 = vpack.c.bf16 %v2284_v36, %v2283_v35  ;;  %v2254_v48 = vld [vmem:[%s6010_s0 + $0x8b8] sm:$0xff] }
  0x75   :  { %3450 = vmatpush3.bf16.msra.mxu0 %v3449_v26  ;;  %391 = vperm.xlu0 %3754, %v112_v37   ;;  %v3499_v26 = vpack.c.bf16 %v2250_v16, %v2249_v15  ;;  %v77_v38 = vld [vmem:[%s6011_s1 + $0x168] sm:$0xff]  ;;  %v2235_v39 = vld [vmem:[%s6010_s0 + $0x820] sm:$0xff]  ;;  %v78_v50 = vld [vmem:[%s6011_s1 + $0x170] sm:$0xff] }
  0x76   :  { %949 = vmatmul.mubr.f32.gmra.mrb[28].mxu1 %v106_v27  ;;  %3452 = vmatprep.subr.bf16.mxu0 %v3451_v29  ;;  %v2265_v27 = vld [vmem:[%s6010_s0 + $0x910] sm:$0xff]  ;;  %v63_v29 = vld [vmem:[%s6011_s1 + $0xf8] sm:$0xff]  ;;  %v76_v41 = vld [vmem:[%s6011_s1 + $0x160] sm:$0xff] }
  0x77   :  { %3482 = vmatpush3.bf16.msra.mxu1 %v3481_v28  ;;  %1018 = vmatprep.mubr.f32.mxu0 %v45_v42  ;;  %v2266_v28 = vld [vmem:[%s6010_s0 + $0x918] sm:$0xff]  ;;  %v3503_v42 = vpack.c.bf16 %v2252_v32, %v2251_v31  ;;  %v2285_v51 = vld [vmem:[%s6010_s0 + $0x9b0] sm:$0xff]  ;;  %v93_v54 = vld [vmem:[%s6011_s1 + $0x1e8] sm:$0xff] }
  0x78   :  { %3484 = vmatprep.subr.bf16.mxu1 %v3483_v33  ;;  %1108 = vmatprep.mubr.f32.mxu1 %v47_v43  ;;  %v3501_v33 = vpack.c.bf16 %v2234_v24, %v2233_v23  ;;  %v3533_v37 = vpack.c.bf16 %v2266_v28, %v2265_v27  ;;  %v2267_v43 = vld [vmem:[%s6010_s0 + $0x920] sm:$0xff]  ;;  %v2269_v60 = vld [vmem:[%s6010_s0 + $0x930] sm:$0xff]  ;;  %v2270_v61 = vld [vmem:[%s6010_s0 + $0x938] sm:$0xff] }
  0x79   :  { %3454 = vmatpush3.bf16.msra.mxu0 %v3453_v40  ;;  %401 = vperm.xlu1 %3755, %v114_v52   ;;  %v2236_v40 = vld [vmem:[%s6010_s0 + $0x828] sm:$0xff]  ;;  %v2286_v52 = vld [vmem:[%s6010_s0 + $0x9b8] sm:$0xff]  ;;  %v92_v57 = vld [vmem:[%s6011_s1 + $0x1e0] sm:$0xff] }
  0x7a   :  { %3456 = vmatprep.subr.bf16.mxu0 %v3455_v45  ;;  %396 = vperm.xlu0 %3754, %v113_v55   ;;  %v79_v45 = vld [vmem:[%s6011_s1 + $0x178] sm:$0xff]  ;;  %v2237_v55 = vld [vmem:[%s6010_s0 + $0x830] sm:$0xff]  ;;  %v3539_v62 = vpack.c.bf16 %v2286_v52, %v2285_v51  ;;  %v2255_v0 = vld [vmem:[%s6010_s0 + $0x8c0] sm:$0xff] }
  0x7b   :  { %3486 = vmatpush3.bf16.msra.mxu1 %v3485_v44  ;;  %v2268_v44 = vld [vmem:[%s6010_s0 + $0x928] sm:$0xff]  ;;  %v2287_v4 = vld [vmem:[%s6010_s0 + $0x9c0] sm:$0xff]  ;;  %v2257_v12 = vld [vmem:[%s6010_s0 + $0x8d0] sm:$0xff] }
  0x7c   :  { %3488 = vmatprep.subr.bf16.mxu1 %v3487_v49  ;;  %v3505_v49 = vpack.c.bf16 %v2236_v40, %v2235_v39  ;;  %v3537_v53 = vpack.c.bf16 %v2268_v44, %v2267_v43  ;;  %v2256_v1 = vld [vmem:[%s6010_s0 + $0x8c8] sm:$0xff]  ;;  %v2271_v9 = vld [vmem:[%s6010_s0 + $0x940] sm:$0xff]  ;;  %v2289_v16 = vld [vmem:[%s6010_s0 + $0x9d0] sm:$0xff] }
  0x7d   :  { %3458 = vmatpush3.bf16.msra.mxu0 %v3457_v56  ;;  %406 = vperm.xlu1 %3755, %v115_v2   ;;  %v2238_v56 = vld [vmem:[%s6010_s0 + $0x838] sm:$0xff]  ;;  %v109_v3 = vld [vmem:[%s6011_s1 + $0x268] sm:$0xf]  ;;  %v110_v20 = vld [vmem:[%s6011_s1 + $0x270] sm:$0xf] }
  0x7e   :  { %3460 = vmatprep.subr.bf16.mxu0 %v3459_v59  ;;  %411 = vperm.xlu0 %3754, %v116_v13   ;;  %v95_v59 = vld [vmem:[%s6011_s1 + $0x1f8] sm:$0xff]  ;;  %v3509_v2 = vpack.c.bf16 %v2238_v56, %v2237_v55  ;;  %v2240_v8 = vld [vmem:[%s6010_s0 + $0x848] sm:$0xff]  ;;  %v2241_v23 = vld [vmem:[%s6010_s0 + $0x850] sm:$0xff] }
  0x7f   :  { %3490 = vmatpush3.bf16.msra.mxu1 %v3489_v58  ;;  %v3507_v58 = vpack.c.bf16 %v2254_v48, %v2253_v47  ;;  %v2272_v11 = vld [vmem:[%s6010_s0 + $0x948] sm:$0xff]  ;;  %v2258_v13 = vld [vmem:[%s6010_s0 + $0x8d8] sm:$0xff]  ;;  %v2259_v28 = vld [vmem:[%s6010_s0 + $0x8e0] sm:$0xff] }
  0x80   :  { %3492 = vmatprep.subr.bf16.mxu1 %v3491_v63  ;;  %v94_v63 = vld [vmem:[%s6011_s1 + $0x1f0] sm:$0xff]  ;;  %v2242_v24 = vld [vmem:[%s6010_s0 + $0x858] sm:$0xff]  ;;  %v2292_v31 = vld [vmem:[%s6010_s0 + $0x9e8] sm:$0xff] }
  0x81   :  { %3462 = vmatpush3.bf16.msra.mxu0 %v3461_v5  ;;  %v2288_v5 = vld [vmem:[%s6010_s0 + $0x9c8] sm:$0xff]  ;;  %v2274_v27 = vld [vmem:[%s6010_s0 + $0x958] sm:$0xff]  ;;  %v3517_v32 = vpack.c.bf16 %v2242_v24, %v2241_v23  ;;  %v2243_v35 = vld [vmem:[%s6010_s0 + $0x860] sm:$0xff] }
  0x82   :  { %3496 = vmatprep.subr.bf16.mxu0 %v3495_v7  ;;  %v2239_v7 = vld [vmem:[%s6010_s0 + $0x840] sm:$0xff]  ;;  %v3543_v15 = vpack.c.bf16 %v2288_v5, %v2287_v4  ;;  %v2244_v36 = vld [vmem:[%s6010_s0 + $0x868] sm:$0xff]  ;;  %v2261_v40 = vld [vmem:[%s6010_s0 + $0x8f0] sm:$0xff] }
  0x83   :  { %3494 = vmatpush3.bf16.msra.mxu1 %v3493_v6  ;;  %v3541_v6 = vpack.c.bf16 %v2270_v61, %v2269_v60  ;;  %v3513_v19 = vpack.c.bf16 %v2240_v8, %v2239_v7  ;;  %v2276_v39 = vld [vmem:[%s6010_s0 + $0x968] sm:$0xff]  ;;  %v2293_v43 = vld [vmem:[%s6010_s0 + $0x9f0] sm:$0xff]  ;;  %v2294_v44 = vld [vmem:[%s6010_s0 + $0x9f8] sm:$0xff] }
  0x84   :  { %3528 = vmatprep.subr.bf16.mxu1 %v3527_v10  ;;  %1019 = vmatmul.mubr.f32.vlgmr.msra.gmra.mrb[30].mxu0 %v44_v14  ;;  %v3511_v10 = vpack.c.bf16 %v2256_v1, %v2255_v0  ;;  %v111_v14 = vld [vmem:[%s6011_s1 + $0x278] sm:$0xf]  ;;  %v2277_v51 = vld [vmem:[%s6010_s0 + $0x970] sm:$0xff]  ;;  %v3555_v52 = vpack.c.bf16 %v2294_v44, %v2293_v43  ;;  %v2312_v55 = vld [vmem:[%s6010_s0 + $0xa88] sm:$0xff] }
  0x85   :  { %3498 = vmatpush3.bf16.msra.mxu0 %v3497_v17  ;;  %1023 = vmatprep.mubr.f32.mxu0 %v61_v22  ;;  %v2290_v17 = vld [vmem:[%s6010_s0 + $0x9d8] sm:$0xff]  ;;  %v3515_v22 = vpack.c.bf16 %v2258_v13, %v2257_v12  ;;  %v2343_v56 = vld [vmem:[%s6010_s0 + $0xb80] sm:$0xff]  ;;  %v2328_v1 = vld [vmem:[%s6010_s0 + $0xb08] sm:$0xff] }
  0x86   :  { %1109 = vmatmul.mubr.f32.vlgmr.msra.gmra.mrb[30].mxu1 %v46_v18  ;;  %3500 = vmatprep.subr.bf16.mxu0 %v3499_v26  ;;  %v108_v18 = vld [vmem:[%s6011_s1 + $0x260] sm:$0xf]  ;;  %v3547_v26 = vpack.c.bf16 %v2290_v17, %v2289_v16  ;;  %v2345_v4 = vld [vmem:[%s6010_s0 + $0xb90] sm:$0xff]  ;;  %v2346_v5 = vld [vmem:[%s6010_s0 + $0xb98] sm:$0xff] }
  0x87   :  { %3530 = vmatpush3.bf16.msra.mxu1 %v3529_v21  ;;  %1113 = vmatprep.mubr.f32.mxu1 %v63_v29  ;;  %v3545_v21 = vpack.c.bf16 %v2272_v11, %v2271_v9  ;;  %v2260_v29 = vld [vmem:[%s6010_s0 + $0x8e8] sm:$0xff]  ;;  %v2295_v61 = vld [vmem:[%s6010_s0 + $0xa00] sm:$0xff]  ;;  %v2297_v9 = vld [vmem:[%s6010_s0 + $0xa10] sm:$0xff]  ;;  %v3595_v12 = vpack.c.bf16 %v2346_v5, %v2345_v4 }
  0x88   :  { %1024 = vmatmul.mubr.f32.gmra.mrb[32].mxu0 %v60_v25  ;;  %3532 = vmatprep.subr.bf16.mxu1 %v3531_v30  ;;  %v2273_v25 = vld [vmem:[%s6010_s0 + $0x950] sm:$0xff]  ;;  %v2291_v30 = vld [vmem:[%s6010_s0 + $0x9e0] sm:$0xff]  ;;  %v2330_v13 = vld [vmem:[%s6010_s0 + $0xb18] sm:$0xff] }
  0x89   :  { %3502 = vmatpush3.bf16.msra.mxu0 %v3501_v33  ;;  %1028 = vmatprep.mubr.f32.mxu0 %v77_v38  ;;  %v3549_v33 = vpack.c.bf16 %v2274_v27, %v2273_v25  ;;  %v3551_v38 = vpack.c.bf16 %v2292_v31, %v2291_v30  ;;  %v2329_v11 = vld [vmem:[%s6010_s0 + $0xb10] sm:$0xff]  ;;  %v3758_v16 = vld [vmem:[%s6011_s1] sm:$0xff]  ;;  %v2300_v24 = vld [vmem:[%s6010_s0 + $0xa28] sm:$0xff] }
  0x8a   :  { %1114 = vmatmul.mubr.f32.gmra.mrb[32].mxu1 %v62_v34  ;;  %3504 = vmatprep.subr.bf16.mxu0 %v3503_v42  ;;  %v3519_v34 = vpack.c.bf16 %v2260_v29, %v2259_v28  ;;  %v3756_v42 = vld [vmem:[%s6011_s1 + $0x8] sm:$0xff]  ;;  %v2347_v17 = vld [vmem:[%s6010_s0 + $0xba0] sm:$0xff]  ;;  %v2317_v28 = vld [vmem:[%s6010_s0 + $0xab0] sm:$0xff] }
  0x8b   :  { %3534 = vmatpush3.bf16.msra.mxu1 %v3533_v37  ;;  %1118 = vmatprep.mubr.f32.mxu1 %v79_v45  ;;  %v2275_v37 = vld [vmem:[%s6010_s0 + $0x960] sm:$0xff]  ;;  %v3757_v45 = vld [vmem:[%s6011_s1 + $0x18] sm:$0xff]  ;;  %v2332_v27 = vld [vmem:[%s6010_s0 + $0xb28] sm:$0xff] }
  0x8c   :  { %1029 = vmatmul.mubr.f32.gmra.mrb[34].mxu0 %v76_v41  ;;  %3536 = vmatprep.subr.bf16.mxu1 %v3535_v46  ;;  %v2262_v41 = vld [vmem:[%s6010_s0 + $0x8f8] sm:$0xff]  ;;  %v3521_v46 = vpack.c.bf16 %v2244_v36, %v2243_v35  ;;  %v3553_v47 = vpack.c.bf16 %v2276_v39, %v2275_v37  ;;  %v2299_v23 = vld [vmem:[%s6010_s0 + $0xa20] sm:$0xff]  ;;  %v3760_v30 = vld [vmem:[%s6011_s1 + $0x88] sm:$0xff] }
  0x8d   :  { %3506 = vmatpush3.bf16.msra.mxu0 %v3505_v49  ;;  %1033 = vmatprep.mubr.f32.mxu0 %v93_v54  ;;  %v3523_v48 = vpack.c.bf16 %v2262_v41, %v2261_v40  ;;  %v2245_v49 = vld [vmem:[%s6010_s0 + $0x870] sm:$0xff]  ;;  %v2311_v54 = vld [vmem:[%s6010_s0 + $0xa80] sm:$0xff]  ;;  %v2318_v29 = vld [vmem:[%s6010_s0 + $0xab8] sm:$0xff]  ;;  %v3569_v35 = vpack.c.bf16 %v2300_v24, %v2299_v23 }
  0x8e   :  { %1119 = vmatmul.mubr.f32.gmra.mrb[34].mxu1 %v78_v50  ;;  %3508 = vmatprep.subr.bf16.mxu0 %v3507_v58  ;;  %v2246_v50 = vld [vmem:[%s6010_s0 + $0x878] sm:$0xff]  ;;  %v3559_v60 = vpack.c.bf16 %v2312_v55, %v2311_v54  ;;  %v2331_v25 = vld [vmem:[%s6010_s0 + $0xb20] sm:$0xff]  ;;  %v2349_v31 = vld [vmem:[%s6010_s0 + $0xbb0] sm:$0xff] }
  0x8f   :  { %3538 = vmatpush3.bf16.msra.mxu1 %v3537_v53  ;;  %1123 = vmatprep.mubr.f32.mxu1 %v95_v59  ;;  %v2278_v53 = vld [vmem:[%s6010_s0 + $0x978] sm:$0xff]  ;;  %v3525_v58 = vpack.c.bf16 %v2246_v50, %v2245_v49  ;;  %v3763_v36 = vld [vmem:[%s6011_s1 + $0x90] sm:$0xff]  ;;  %v3601_v37 = vpack.c.bf16 %v2332_v27, %v2331_v25  ;;  %v2319_v44 = vld [vmem:[%s6010_s0 + $0xac0] sm:$0xff] }
  0x90   :  { %1034 = vmatmul.mubr.f32.gmra.mrb[36].mxu0 %v92_v57  ;;  %3540 = vmatprep.subr.bf16.mxu1 %v3539_v62  ;;  %v2344_v57 = vld [vmem:[%s6010_s0 + $0xb88] sm:$0xff]  ;;  %v3557_v59 = vpack.c.bf16 %v2278_v53, %v2277_v51  ;;  %v2301_v39 = vld [vmem:[%s6010_s0 + $0xa30] sm:$0xff]  ;;  %v2302_v40 = vld [vmem:[%s6010_s0 + $0xa38] sm:$0xff] }
  0x91   :  { %3510 = vmatpush3.bf16.msra.mxu0 %v3509_v2  ;;  %1038 = vmatprep.mubr.f32.mxu0 %v109_v3  ;;  %v2296_v62 = vld [vmem:[%s6010_s0 + $0xa08] sm:$0xff]  ;;  %v3591_v0 = vpack.c.bf16 %v2344_v57, %v2343_v56  ;;  %v2313_v2 = vld [vmem:[%s6010_s0 + $0xa90] sm:$0xff]  ;;  %v2314_v3 = vld [vmem:[%s6010_s0 + $0xa98] sm:$0xff]  ;;  %v3573_v51 = vpack.c.bf16 %v2302_v40, %v2301_v39 }
  0x92   :  { %1124 = vmatmul.mubr.f32.gmra.mrb[36].mxu1 %v94_v63  ;;  %3512 = vmatprep.subr.bf16.mxu0 %v3511_v10  ;;  %v2327_v63 = vld [vmem:[%s6010_s0 + $0xb00] sm:$0xff]  ;;  %v3563_v8 = vpack.c.bf16 %v2314_v3, %v2313_v2  ;;  %v2298_v10 = vld [vmem:[%s6010_s0 + $0xa18] sm:$0xff]  ;;  %v2333_v41 = vld [vmem:[%s6010_s0 + $0xb30] sm:$0xff] }
  0x93   :  { %3542 = vmatpush3.bf16.msra.mxu1 %v3541_v6  ;;  %1128 = vmatprep.mubr.f32.mxu1 %v111_v14  ;;  %v3561_v6 = vpack.c.bf16 %v2296_v62, %v2295_v61  ;;  %v3593_v7 = vpack.c.bf16 %v2328_v1, %v2327_v63  ;;  %v2315_v14 = vld [vmem:[%s6010_s0 + $0xaa0] sm:$0xff]  ;;  %v2334_v43 = vld [vmem:[%s6010_s0 + $0xb38] sm:$0xff]  ;;  %v2304_v56 = vld [vmem:[%s6010_s0 + $0xa48] sm:$0xff] }
  0x94   :  { %1039 = vmatmul.mubr.f32.gmra.mrb[38].mxu0 %v108_v18  ;;  %3544 = vmatprep.subr.bf16.mxu1 %v3543_v15  ;;  %v2316_v15 = vld [vmem:[%s6010_s0 + $0xaa8] sm:$0xff]  ;;  %v3765_v49 = vld [vmem:[%s6011_s1 + $0x100] sm:$0xff]  ;;  %v3766_v50 = vld [vmem:[%s6011_s1 + $0x118] sm:$0xff]  ;;  %v3605_v53 = vpack.c.bf16 %v2334_v43, %v2333_v41 }
  0x95   :  { %3514 = vmatpush3.bf16.msra.mxu0 %v3513_v19  ;;  %1494 = vmatprep.mubr.f32.mxu0 %v3756_v42  ;;  %v2348_v18 = vld [vmem:[%s6010_s0 + $0xba8] sm:$0xff]  ;;  %v3759_v19 = vld [vmem:[%s6011_s1 + $0x10] sm:$0xff]  ;;  %v2303_v55 = vld [vmem:[%s6010_s0 + $0xa40] sm:$0xff] }
  0x96   :  { %1129 = vmatmul.mubr.f32.gmra.mrb[38].mxu1 %v110_v20  ;;  %3516 = vmatprep.subr.bf16.mxu0 %v3515_v22  ;;  %v3565_v20 = vpack.c.bf16 %v2298_v10, %v2297_v9  ;;  %v3567_v22 = vpack.c.bf16 %v2316_v15, %v2315_v14  ;;  %v2335_v57 = vld [vmem:[%s6010_s0 + $0xb40] sm:$0xff]  ;;  %v2322_v61 = vld [vmem:[%s6010_s0 + $0xad8] sm:$0xff]  ;;  %v3768_v62 = vld [vmem:[%s6011_s1 + $0x188] sm:$0xff]  ;;  %v3577_v3 = vpack.c.bf16 %v2304_v56, %v2303_v55 }
  0x97   :  { %3546 = vmatpush3.bf16.msra.mxu1 %v3545_v21  ;;  %1584 = vmatprep.mubr.f32.mxu1 %v3757_v45  ;;  %v3597_v21 = vpack.c.bf16 %v2330_v13, %v2329_v11  ;;  %v2320_v45 = vld [vmem:[%s6010_s0 + $0xac8] sm:$0xff]  ;;  %v2353_v63 = vld [vmem:[%s6010_s0 + $0xbd0] sm:$0xff]  ;;  %v3769_v1 = vld [vmem:[%s6011_s1 + $0x180] sm:$0xff] }
  0x98   :  { %3548 = vmatprep.subr.bf16.mxu1 %v3547_v26  ;;  %v3599_v26 = vpack.c.bf16 %v2348_v18, %v2347_v17  ;;  %v3575_v54 = vpack.c.bf16 %v2320_v45, %v2319_v44  ;;  %v3770_v2 = vld [vmem:[%s6011_s1 + $0x198] sm:$0xff]  ;;  %v3771_v4 = vld [vmem:[%s6011_s1 + $0x190] sm:$0xff]  ;;  %v2324_v13 = vld [vmem:[%s6010_s0 + $0xae8] sm:$0xff] }
  0x99   :  { %3518 = vmatpush3.bf16.msra.mxu0 %v3517_v32  ;;  %v2350_v32 = vld [vmem:[%s6010_s0 + $0xbb8] sm:$0xff]  ;;  %v2337_v9 = vld [vmem:[%s6010_s0 + $0xb50] sm:$0xff]  ;;  %v3772_v14 = vld [vmem:[%s6011_s1 + $0x208] sm:$0xf] }
  0x9a   :  { %3520 = vmatprep.subr.bf16.mxu0 %v3519_v34  ;;  %v3762_v34 = vld [vmem:[%s6011_s1 + $0x98] sm:$0xff]  ;;  %v3603_v42 = vpack.c.bf16 %v2350_v32, %v2349_v31  ;;  %v2355_v15 = vld [vmem:[%s6010_s0 + $0xbe0] sm:$0xff]  ;;  %v2308_v24 = vld [vmem:[%s6010_s0 + $0xa68] sm:$0xff] }
  0x9b   :  { %3550 = vmatpush3.bf16.msra.mxu1 %v3549_v33  ;;  %v3761_v33 = vld [vmem:[%s6011_s1 + $0x80] sm:$0xff]  ;;  %v2338_v11 = vld [vmem:[%s6010_s0 + $0xb58] sm:$0xff]  ;;  %v2340_v27 = vld [vmem:[%s6010_s0 + $0xb68] sm:$0xff] }
  0x9c   :  { %3552 = vmatprep.subr.bf16.mxu1 %v3551_v38  ;;  %v3571_v38 = vpack.c.bf16 %v2318_v29, %v2317_v28  ;;  %v3773_v17 = vld [vmem:[%s6011_s1 + $0x200] sm:$0xf]  ;;  %v3774_v18 = vld [vmem:[%s6011_s1 + $0x218] sm:$0xf]  ;;  %v2325_v28 = vld [vmem:[%s6010_s0 + $0xaf0] sm:$0xff] }
  0x9d   :  { %3522 = vmatpush3.bf16.msra.mxu0 %v3521_v46  ;;  %v3764_v46 = vld [vmem:[%s6011_s1 + $0x108] sm:$0xff]  ;;  %v2307_v23 = vld [vmem:[%s6010_s0 + $0xa60] sm:$0xff]  ;;  %v2326_v29 = vld [vmem:[%s6010_s0 + $0xaf8] sm:$0xff] }
  0x9e   :  { %3524 = vmatprep.subr.bf16.mxu0 %v3523_v48  ;;  %v2352_v48 = vld [vmem:[%s6010_s0 + $0xbc8] sm:$0xff]  ;;  %v2339_v25 = vld [vmem:[%s6010_s0 + $0xb60] sm:$0xff]  ;;  %v2357_v31 = vld [vmem:[%s6010_s0 + $0xbf0] sm:$0xff] }
  0x9f   :  { %3554 = vmatpush3.bf16.msra.mxu1 %v3553_v47  ;;  %v2351_v47 = vld [vmem:[%s6010_s0 + $0xbc0] sm:$0xff]  ;;  %v2358_v32 = vld [vmem:[%s6010_s0 + $0xbf8] sm:$0xff]  ;;  %v2341_v39 = vld [vmem:[%s6010_s0 + $0xb70] sm:$0xff] }
  0xa0   :  { %3556 = vmatprep.subr.bf16.mxu1 %v3555_v52  ;;  %v3767_v52 = vld [vmem:[%s6011_s1 + $0x110] sm:$0xff]  ;;  %v3619_v40 = vpack.c.bf16 %v2358_v32, %v2357_v31  ;;  %v2342_v41 = vld [vmem:[%s6010_s0 + $0xb78] sm:$0xff]  ;;  %v2376_v43 = vld [vmem:[%s6010_s0 + $0xc88] sm:$0xff] }
  0xa1   :  { %3526 = vmatpush3.bf16.msra.mxu0 %v3525_v58  ;;  %v3607_v58 = vpack.c.bf16 %v2352_v48, %v2351_v47  ;;  %v2407_v44 = vld [vmem:[%s6010_s0 + $0xd80] sm:$0xff]  ;;  %v2408_v45 = vld [vmem:[%s6010_s0 + $0xd88] sm:$0xff]  ;;  %v3621_v47 = vpack.c.bf16 %v2342_v41, %v2341_v39  ;;  %v2378_v55 = vld [vmem:[%s6010_s0 + $0xc98] sm:$0xff] }
  0xa2   :  { %3560 = vmatprep.subr.bf16.mxu0 %v3559_v60  ;;  %v2321_v60 = vld [vmem:[%s6010_s0 + $0xad0] sm:$0xff]  ;;  %v2398_v32 = vld [vmem:[%s6010_s0 + $0xd38] sm:$0xff]  ;;  %v2415_v39 = vld [vmem:[%s6010_s0 + $0xdc0] sm:$0xff] }
  0xa3   :  { %3558 = vmatpush3.bf16.msra.mxu1 %v3557_v59  ;;  %v2336_v59 = vld [vmem:[%s6010_s0 + $0xb48] sm:$0xff]  ;;  %v2397_v31 = vld [vmem:[%s6010_s0 + $0xd30] sm:$0xff] }
  0xa4   :  { %3592 = vmatprep.subr.bf16.mxu1 %v3591_v0  ;;  %1495 = vmatmul.mubr.f32.vlgmr.msra.gmra.mrb[40].mxu0 %v3758_v16  ;;  %v2354_v0 = vld [vmem:[%s6010_s0 + $0xbd8] sm:$0xff]  ;;  %v3609_v5 = vpack.c.bf16 %v2336_v59, %v2335_v57  ;;  %v2356_v16 = vld [vmem:[%s6010_s0 + $0xbe8] sm:$0xff]  ;;  %v2409_v57 = vld [vmem:[%s6010_s0 + $0xd90] sm:$0xff] }
  0xa5   :  { %3562 = vmatpush3.bf16.msra.mxu0 %v3561_v6  ;;  %1499 = vmatprep.mubr.f32.mxu0 %v3760_v30  ;;  %v3579_v6 = vpack.c.bf16 %v2322_v61, %v2321_v60  ;;  %v3611_v10 = vpack.c.bf16 %v2354_v0, %v2353_v63  ;;  %v3776_v30 = vld [vmem:[%s6011_s1 + $0x28] sm:$0xff]  ;;  %v2361_v60 = vld [vmem:[%s6010_s0 + $0xc10] sm:$0xff]  ;;  %v2362_v61 = vld [vmem:[%s6010_s0 + $0xc18] sm:$0xff] }
  0xa6   :  { %1585 = vmatmul.mubr.f32.vlgmr.msra.gmra.mrb[40].mxu1 %v3759_v19  ;;  %3564 = vmatprep.subr.bf16.mxu0 %v3563_v8  ;;  %v2306_v8 = vld [vmem:[%s6010_s0 + $0xa58] sm:$0xff]  ;;  %v2393_v63 = vld [vmem:[%s6010_s0 + $0xd10] sm:$0xff]  ;;  %v3788_v41 = vld [vmem:[%s6011_s1 + $0x1a8] sm:$0xff] }
  0xa7   :  { %3594 = vmatpush3.bf16.msra.mxu1 %v3593_v7  ;;  %1589 = vmatprep.mubr.f32.mxu1 %v3762_v34  ;;  %v2305_v7 = vld [vmem:[%s6010_s0 + $0xa50] sm:$0xff]  ;;  %v3585_v34 = vpack.c.bf16 %v2308_v24, %v2307_v23  ;;  %v2394_v0 = vld [vmem:[%s6010_s0 + $0xd18] sm:$0xff] }
  0xa8   :  { %3596 = vmatprep.subr.bf16.mxu1 %v3595_v12  ;;  %1500 = vmatmul.mubr.f32.gmra.mrb[42].mxu0 %v3761_v33  ;;  %v2323_v12 = vld [vmem:[%s6010_s0 + $0xae0] sm:$0xff]  ;;  %v3581_v19 = vpack.c.bf16 %v2306_v8, %v2305_v7  ;;  %v3777_v33 = vld [vmem:[%s6011_s1 + $0x38] sm:$0xff]  ;;  %v2412_v8 = vld [vmem:[%s6010_s0 + $0xda8] sm:$0xff] }
  0xa9   :  { %3566 = vmatpush3.bf16.msra.mxu0 %v3565_v20  ;;  %1504 = vmatprep.mubr.f32.mxu0 %v3764_v46  ;;  %v3775_v20 = vld [vmem:[%s6011_s1 + $0x210] sm:$0xf]  ;;  %v2411_v7 = vld [vmem:[%s6010_s0 + $0xda0] sm:$0xff]  ;;  %v2414_v24 = vld [vmem:[%s6010_s0 + $0xdb8] sm:$0xff] }
  0xaa   :  { %1590 = vmatmul.mubr.f32.gmra.mrb[42].mxu1 %v3763_v36  ;;  %3568 = vmatprep.subr.bf16.mxu0 %v3567_v22  ;;  %v3583_v22 = vpack.c.bf16 %v2324_v13, %v2323_v12  ;;  %v3587_v36 = vpack.c.bf16 %v2326_v29, %v2325_v28  ;;  %v2364_v12 = vld [vmem:[%s6010_s0 + $0xc28] sm:$0xff]  ;;  %v3781_v13 = vld [vmem:[%s6011_s1 + $0xb8] sm:$0xff]  ;;  %v2413_v23 = vld [vmem:[%s6010_s0 + $0xdb0] sm:$0xff] }
  0xab   :  { %3598 = vmatpush3.bf16.msra.mxu1 %v3597_v21  ;;  %1594 = vmatprep.mubr.f32.mxu1 %v3766_v50  ;;  %v3613_v21 = vpack.c.bf16 %v2338_v11, %v2337_v9  ;;  %v2360_v50 = vld [vmem:[%s6010_s0 + $0xc08] sm:$0xff]  ;;  %v2363_v11 = vld [vmem:[%s6010_s0 + $0xc20] sm:$0xff]  ;;  %v2366_v28 = vld [vmem:[%s6010_s0 + $0xc38] sm:$0xff] }
  0xac   :  { %3600 = vmatprep.subr.bf16.mxu1 %v3599_v26  ;;  %1505 = vmatmul.mubr.f32.gmra.mrb[44].mxu0 %v3765_v49  ;;  %v3615_v26 = vpack.c.bf16 %v2356_v16, %v2355_v15  ;;  %v2359_v49 = vld [vmem:[%s6010_s0 + $0xc00] sm:$0xff]  ;;  %v3780_v9 = vld [vmem:[%s6011_s1 + $0xa8] sm:$0xff]  ;;  %v3785_v29 = vld [vmem:[%s6011_s1 + $0x138] sm:$0xff] }
  0xad   :  { %3570 = vmatpush3.bf16.msra.mxu0 %v3569_v35  ;;  %1509 = vmatprep.mubr.f32.mxu0 %v3768_v62  ;;  %v3617_v35 = vpack.c.bf16 %v2340_v27, %v2339_v25  ;;  %v3625_v56 = vpack.c.bf16 %v2360_v50, %v2359_v49  ;;  %v2395_v15 = vld [vmem:[%s6010_s0 + $0xd20] sm:$0xff]  ;;  %v2396_v16 = vld [vmem:[%s6010_s0 + $0xd28] sm:$0xff]  ;;  %v2365_v27 = vld [vmem:[%s6010_s0 + $0xc30] sm:$0xff] }
  0xae   :  { %1595 = vmatmul.mubr.f32.gmra.mrb[44].mxu1 %v3767_v52  ;;  %3572 = vmatprep.subr.bf16.mxu0 %v3571_v38  ;;  %v2310_v38 = vld [vmem:[%s6010_s0 + $0xa78] sm:$0xff]  ;;  %v2391_v52 = vld [vmem:[%s6010_s0 + $0xd00] sm:$0xff]  ;;  %v3784_v25 = vld [vmem:[%s6011_s1 + $0x128] sm:$0xff] }
  0xaf   :  { %3602 = vmatpush3.bf16.msra.mxu1 %v3601_v37  ;;  %1599 = vmatprep.mubr.f32.mxu1 %v3770_v2  ;;  %v2309_v37 = vld [vmem:[%s6010_s0 + $0xa70] sm:$0xff]  ;;  %v2386_v50 = vld [vmem:[%s6010_s0 + $0xcd8] sm:$0xff] }
  0xb0   :  { %3604 = vmatprep.subr.bf16.mxu1 %v3603_v42  ;;  %1510 = vmatmul.mubr.f32.gmra.mrb[46].mxu0 %v3769_v1  ;;  %v2375_v42 = vld [vmem:[%s6010_s0 + $0xc80] sm:$0xff]  ;;  %v3589_v46 = vpack.c.bf16 %v2310_v38, %v2309_v37  ;;  %v3787_v37 = vld [vmem:[%s6011_s1 + $0x130] sm:$0xff]  ;;  %v3637_v38 = vpack.c.bf16 %v2366_v28, %v2365_v27 }
  0xb1   :  { %3574 = vmatpush3.bf16.msra.mxu0 %v3573_v51  ;;  %1514 = vmatprep.mubr.f32.mxu0 %v3772_v14  ;;  %v3623_v48 = vpack.c.bf16 %v2376_v43, %v2375_v42  ;;  %v3655_v51 = vpack.c.bf16 %v2408_v45, %v2407_v44  ;;  %v3778_v1 = vld [vmem:[%s6011_s1 + $0x20] sm:$0xff]  ;;  %v3669_v42 = vpack.c.bf16 %v2398_v32, %v2397_v31  ;;  %v2368_v44 = vld [vmem:[%s6010_s0 + $0xc48] sm:$0xff]  ;;  %v2385_v49 = vld [vmem:[%s6010_s0 + $0xcd0] sm:$0xff] }
  0xb2   :  { %1600 = vmatmul.mubr.f32.gmra.mrb[46].mxu1 %v3771_v4  ;;  %3576 = vmatprep.subr.bf16.mxu0 %v3575_v54  ;;  %v2377_v54 = vld [vmem:[%s6010_s0 + $0xc90] sm:$0xff]  ;;  %v2380_v4 = vld [vmem:[%s6010_s0 + $0xca8] sm:$0xff]  ;;  %v2367_v43 = vld [vmem:[%s6010_s0 + $0xc40] sm:$0xff] }
  0xb3   :  { %3606 = vmatpush3.bf16.msra.mxu1 %v3605_v53  ;;  %1604 = vmatprep.mubr.f32.mxu1 %v3774_v18  ;;  %v2392_v53 = vld [vmem:[%s6010_s0 + $0xd08] sm:$0xff]  ;;  %v3627_v62 = vpack.c.bf16 %v2378_v55, %v2377_v54  ;;  %v3663_v18 = vpack.c.bf16 %v2412_v8, %v2411_v7  ;;  %v2399_v45 = vld [vmem:[%s6010_s0 + $0xd40] sm:$0xff]  ;;  %v2418_v54 = vld [vmem:[%s6010_s0 + $0xdd8] sm:$0xff] }
  0xb4   :  { %3608 = vmatprep.subr.bf16.mxu1 %v3607_v58  ;;  %1515 = vmatmul.mubr.f32.gmra.mrb[48].mxu0 %v3773_v17  ;;  %v2410_v58 = vld [vmem:[%s6010_s0 + $0xd98] sm:$0xff]  ;;  %v3657_v59 = vpack.c.bf16 %v2392_v53, %v2391_v52  ;;  %v3782_v17 = vld [vmem:[%s6011_s1 + $0xa0] sm:$0xff]  ;;  %v2417_v53 = vld [vmem:[%s6010_s0 + $0xdd0] sm:$0xff] }
  0xb5   :  { %3578 = vmatpush3.bf16.msra.mxu0 %v3577_v3  ;;  %1674 = vmatprep.mubr.f32.mxu0 %v3776_v30  ;;  %v3659_v2 = vpack.c.bf16 %v2410_v58, %v2409_v57  ;;  %v2379_v3 = vld [vmem:[%s6010_s0 + $0xca0] sm:$0xff]  ;;  %v3791_v55 = vld [vmem:[%s6011_s1 + $0x1b0] sm:$0xff]  ;;  %v3792_v57 = vld [vmem:[%s6011_s1 + $0x228] sm:$0xf] }
  0xb6   :  { %1605 = vmatmul.mubr.f32.gmra.mrb[48].mxu1 %v3775_v20  ;;  %3580 = vmatprep.subr.bf16.mxu0 %v3579_v6  ;;  %v3629_v6 = vpack.c.bf16 %v2362_v61, %v2361_v60  ;;  %v3631_v14 = vpack.c.bf16 %v2380_v4, %v2379_v3  ;;  %v2382_v20 = vld [vmem:[%s6010_s0 + $0xcb8] sm:$0xff]  ;;  %v2369_v60 = vld [vmem:[%s6010_s0 + $0xc50] sm:$0xff]  ;;  %v2388_v3 = vld [vmem:[%s6010_s0 + $0xce8] sm:$0xff] }
  0xb7   :  { %3610 = vmatpush3.bf16.msra.mxu1 %v3609_v5  ;;  %1764 = vmatprep.mubr.f32.mxu1 %v3777_v33  ;;  %v3779_v5 = vld [vmem:[%s6011_s1 + $0x30] sm:$0xff]  ;;  %v3786_v33 = vld [vmem:[%s6011_s1 + $0x120] sm:$0xff]  ;;  %v2370_v61 = vld [vmem:[%s6010_s0 + $0xc58] sm:$0xff] }
  0xb8   :  { %3612 = vmatprep.subr.bf16.mxu1 %v3611_v10  ;;  %v3661_v10 = vpack.c.bf16 %v2394_v0, %v2393_v63  ;;  %v3793_v63 = vld [vmem:[%s6011_s1 + $0x238] sm:$0xf]  ;;  %v3675_v0 = vpack.c.bf16 %v2418_v54, %v2417_v53  ;;  %v3794_v4 = vld [vmem:[%s6011_s1 + $0x220] sm:$0xf]  ;;  %v3795_v7 = vld [vmem:[%s6011_s1 + $0x230] sm:$0xf]  ;;  %v3645_v8 = vpack.c.bf16 %v2370_v61, %v2369_v60 }
  0xb9   :  { %3582 = vmatpush3.bf16.msra.mxu0 %v3581_v19  ;;  %v2381_v19 = vld [vmem:[%s6010_s0 + $0xcb0] sm:$0xff]  ;;  %v2440_v31 = vld [vmem:[%s6010_s0 + $0xe88] sm:$0xff]  ;;  %v2471_v32 = vld [vmem:[%s6010_s0 + $0xf80] sm:$0xff] }
  0xba   :  { %3584 = vmatprep.subr.bf16.mxu0 %v3583_v22  ;;  %v3633_v22 = vpack.c.bf16 %v2364_v12, %v2363_v11  ;;  %v3635_v30 = vpack.c.bf16 %v2382_v20, %v2381_v19  ;;  %v2371_v11 = vld [vmem:[%s6010_s0 + $0xc60] sm:$0xff]  ;;  %v2372_v12 = vld [vmem:[%s6010_s0 + $0xc68] sm:$0xff]  ;;  %v2421_v19 = vld [vmem:[%s6010_s0 + $0xdf0] sm:$0xff] }
  0xbb   :  { %3614 = vmatpush3.bf16.msra.mxu1 %v3613_v21  ;;  %v3783_v21 = vld [vmem:[%s6011_s1 + $0xb0] sm:$0xff]  ;;  %v2422_v20 = vld [vmem:[%s6010_s0 + $0xdf8] sm:$0xff]  ;;  %v3798_v53 = vld [vmem:[%s6011_s1 + $0x40] sm:$0xff] }
  0xbc   :  { %3616 = vmatprep.subr.bf16.mxu1 %v3615_v26  ;;  %v3665_v26 = vpack.c.bf16 %v2396_v16, %v2395_v15  ;;  %v2404_v15 = vld [vmem:[%s6010_s0 + $0xd68] sm:$0xff]  ;;  %v2389_v16 = vld [vmem:[%s6010_s0 + $0xcf0] sm:$0xff]  ;;  %v3683_v28 = vpack.c.bf16 %v2422_v20, %v2421_v19  ;;  %v2462_v20 = vld [vmem:[%s6010_s0 + $0xf38] sm:$0xff] }
  0xbd   :  { %3586 = vmatpush3.bf16.msra.mxu0 %v3585_v34  ;;  %v3667_v34 = vpack.c.bf16 %v2414_v24, %v2413_v23  ;;  %v2405_v27 = vld [vmem:[%s6010_s0 + $0xd70] sm:$0xff]  ;;  %v2476_v60 = vld [vmem:[%s6010_s0 + $0xfa8] sm:$0xff] }
  0xbe   :  { %3588 = vmatprep.subr.bf16.mxu0 %v3587_v36  ;;  %v2384_v36 = vld [vmem:[%s6010_s0 + $0xcc8] sm:$0xff]  ;;  %v2461_v19 = vld [vmem:[%s6010_s0 + $0xf30] sm:$0xff] }
  0xbf   :  { %3618 = vmatpush3.bf16.msra.mxu1 %v3617_v35  ;;  %v2383_v35 = vld [vmem:[%s6010_s0 + $0xcc0] sm:$0xff]  ;;  %v3800_v61 = vld [vmem:[%s6011_s1 + $0xc8] sm:$0xff] }
  0xc0   :  { %3620 = vmatprep.subr.bf16.mxu1 %v3619_v40  ;;  %v2416_v40 = vld [vmem:[%s6010_s0 + $0xdc8] sm:$0xff] }
  0xc1   :  { %3590 = vmatpush3.bf16.msra.mxu0 %v3589_v46  ;;  %v3789_v46 = vld [vmem:[%s6011_s1 + $0x1b8] sm:$0xff]  ;;  %v3671_v52 = vpack.c.bf16 %v2416_v40, %v2415_v39  ;;  %v2455_v40 = vld [vmem:[%s6010_s0 + $0xf00] sm:$0xff] }
  0xc2   :  { %3624 = vmatprep.subr.bf16.mxu0 %v3623_v48  ;;  %v2400_v48 = vld [vmem:[%s6010_s0 + $0xd48] sm:$0xff] }
  0xc3   :  { %3622 = vmatpush3.bf16.msra.mxu1 %v3621_v47  ;;  %v3639_v47 = vpack.c.bf16 %v2384_v36, %v2383_v35  ;;  %v3673_v58 = vpack.c.bf16 %v2400_v48, %v2399_v45  ;;  %v2473_v45 = vld [vmem:[%s6010_s0 + $0xf90] sm:$0xff] }
  0xc4   :  { %3656 = vmatprep.subr.bf16.mxu1 %v3655_v51  ;;  %1675 = vmatmul.mubr.f32.vlgmr.msra.gmra.mrb[50].mxu0 %v3778_v1  ;;  %v3790_v51 = vld [vmem:[%s6011_s1 + $0x1a0] sm:$0xff]  ;;  %v2402_v1 = vld [vmem:[%s6010_s0 + $0xd58] sm:$0xff]  ;;  %v2425_v48 = vld [vmem:[%s6010_s0 + $0xe10] sm:$0xff] }
  0xc5   :  { %3626 = vmatpush3.bf16.msra.mxu0 %v3625_v56  ;;  %1679 = vmatprep.mubr.f32.mxu0 %v3780_v9  ;;  %v3641_v56 = vpack.c.bf16 %v2368_v44, %v2367_v43  ;;  %v2442_v43 = vld [vmem:[%s6010_s0 + $0xe98] sm:$0xff] }
  0xc6   :  { %1765 = vmatmul.mubr.f32.vlgmr.msra.gmra.mrb[50].mxu1 %v3779_v5  ;;  %3628 = vmatprep.subr.bf16.mxu0 %v3627_v62  ;;  %v2401_v62 = vld [vmem:[%s6010_s0 + $0xd50] sm:$0xff]  ;;  %v2419_v5 = vld [vmem:[%s6010_s0 + $0xde0] sm:$0xff] }
  0xc7   :  { %3658 = vmatpush3.bf16.msra.mxu1 %v3657_v59  ;;  %1769 = vmatprep.mubr.f32.mxu1 %v3781_v13  ;;  %v3643_v59 = vpack.c.bf16 %v2386_v50, %v2385_v49  ;;  %v3677_v9 = vpack.c.bf16 %v2402_v1, %v2401_v62  ;;  %v2403_v13 = vld [vmem:[%s6010_s0 + $0xd60] sm:$0xff]  ;;  %v2426_v49 = vld [vmem:[%s6010_s0 + $0xe18] sm:$0xff] }
  0xc8   :  { %1680 = vmatmul.mubr.f32.gmra.mrb[52].mxu0 %v3782_v17  ;;  %3660 = vmatprep.subr.bf16.mxu1 %v3659_v2  ;;  %v2387_v2 = vld [vmem:[%s6010_s0 + $0xce0] sm:$0xff]  ;;  %v2390_v17 = vld [vmem:[%s6010_s0 + $0xcf8] sm:$0xff]  ;;  %v3681_v23 = vpack.c.bf16 %v2404_v15, %v2403_v13  ;;  %v3804_v13 = vld [vmem:[%s6011_s1 + $0x148] sm:$0xff] }
  0xc9   :  { %3630 = vmatpush3.bf16.msra.mxu0 %v3629_v6  ;;  %1684 = vmatprep.mubr.f32.mxu0 %v3784_v25  ;;  %v2420_v6 = vld [vmem:[%s6010_s0 + $0xde8] sm:$0xff]  ;;  %v3651_v24 = vpack.c.bf16 %v2390_v17, %v2389_v16  ;;  %v2373_v25 = vld [vmem:[%s6010_s0 + $0xc70] sm:$0xff]  ;;  %v3801_v1 = vld [vmem:[%s6011_s1 + $0xd8] sm:$0xff] }
  0xca   :  { %1770 = vmatmul.mubr.f32.gmra.mrb[52].mxu1 %v3783_v21  ;;  %3632 = vmatprep.subr.bf16.mxu0 %v3631_v14  ;;  %v3679_v14 = vpack.c.bf16 %v2420_v6, %v2419_v5  ;;  %v3797_v21 = vld [vmem:[%s6011_s1 + $0x58] sm:$0xff]  ;;  %v3802_v5 = vld [vmem:[%s6011_s1 + $0xc0] sm:$0xff]  ;;  %v2429_v15 = vld [vmem:[%s6010_s0 + $0xe30] sm:$0xff] }
  0xcb   :  { %3662 = vmatpush3.bf16.msra.mxu1 %v3661_v10  ;;  %1774 = vmatprep.mubr.f32.mxu1 %v3785_v29  ;;  %v3647_v10 = vpack.c.bf16 %v2388_v3, %v2387_v2  ;;  %v2406_v29 = vld [vmem:[%s6010_s0 + $0xd78] sm:$0xff]  ;;  %v2459_v3 = vld [vmem:[%s6010_s0 + $0xf20] sm:$0xff] }
  0xcc   :  { %1685 = vmatmul.mubr.f32.gmra.mrb[54].mxu0 %v3786_v33  ;;  %3664 = vmatprep.subr.bf16.mxu1 %v3663_v18  ;;  %v3796_v18 = vld [vmem:[%s6011_s1 + $0x48] sm:$0xff]  ;;  %v3685_v35 = vpack.c.bf16 %v2406_v29, %v2405_v27  ;;  %v2430_v16 = vld [vmem:[%s6010_s0 + $0xe38] sm:$0xff]  ;;  %v2479_v27 = vld [vmem:[%s6010_s0 + $0xfc0] sm:$0xff] }
  0xcd   :  { %3634 = vmatpush3.bf16.msra.mxu0 %v3633_v22  ;;  %1689 = vmatprep.mubr.f32.mxu0 %v3788_v41  ;;  %v3649_v22 = vpack.c.bf16 %v2372_v12, %v2371_v11  ;;  %v2472_v33 = vld [vmem:[%s6010_s0 + $0xf88] sm:$0xff]  ;;  %v2477_v11 = vld [vmem:[%s6010_s0 + $0xfb0] sm:$0xff]  ;;  %v2478_v12 = vld [vmem:[%s6010_s0 + $0xfb8] sm:$0xff] }
  0xce   :  { %1775 = vmatmul.mubr.f32.gmra.mrb[54].mxu1 %v3787_v37  ;;  %3636 = vmatprep.subr.bf16.mxu0 %v3635_v30  ;;  %v2439_v30 = vld [vmem:[%s6010_s0 + $0xe80] sm:$0xff]  ;;  %v3719_v39 = vpack.c.bf16 %v2472_v33, %v2471_v32  ;;  %v2456_v41 = vld [vmem:[%s6010_s0 + $0xf08] sm:$0xff]  ;;  %v3805_v17 = vld [vmem:[%s6011_s1 + $0x158] sm:$0xff] }
  0xcf   :  { %3666 = vmatpush3.bf16.msra.mxu1 %v3665_v26  ;;  %1779 = vmatprep.mubr.f32.mxu1 %v3789_v46  ;;  %v2374_v26 = vld [vmem:[%s6010_s0 + $0xc78] sm:$0xff]  ;;  %v3687_v36 = vpack.c.bf16 %v2440_v31, %v2439_v30  ;;  %v2423_v37 = vld [vmem:[%s6010_s0 + $0xe00] sm:$0xff]  ;;  %v3808_v29 = vld [vmem:[%s6011_s1 + $0x1c8] sm:$0xff]  ;;  %v3733_v30 = vpack.c.bf16 %v2462_v20, %v2461_v19 }
  0xd0   :  { %1690 = vmatmul.mubr.f32.gmra.mrb[56].mxu0 %v3790_v51  ;;  %3668 = vmatprep.subr.bf16.mxu1 %v3667_v34  ;;  %v3653_v34 = vpack.c.bf16 %v2374_v26, %v2373_v25  ;;  %v2474_v46 = vld [vmem:[%s6010_s0 + $0xf98] sm:$0xff]  ;;  %v2457_v51 = vld [vmem:[%s6010_s0 + $0xf10] sm:$0xff]  ;;  %v3701_v26 = vpack.c.bf16 %v2430_v16, %v2429_v15  ;;  %v2431_v31 = vld [vmem:[%s6010_s0 + $0xe40] sm:$0xff] }
  0xd1   :  { %3638 = vmatpush3.bf16.msra.mxu0 %v3637_v38  ;;  %1694 = vmatprep.mubr.f32.mxu0 %v3792_v57  ;;  %v2424_v38 = vld [vmem:[%s6010_s0 + $0xe08] sm:$0xff]  ;;  %v3723_v54 = vpack.c.bf16 %v2474_v46, %v2473_v45  ;;  %v3799_v57 = vld [vmem:[%s6011_s1 + $0x50] sm:$0xff]  ;;  %v2463_v33 = vld [vmem:[%s6010_s0 + $0xf40] sm:$0xff] }
  0xd2   :  { %1780 = vmatmul.mubr.f32.gmra.mrb[56].mxu1 %v3791_v55  ;;  %3640 = vmatprep.subr.bf16.mxu0 %v3639_v47  ;;  %v3689_v44 = vpack.c.bf16 %v2424_v38, %v2423_v37  ;;  %v3721_v47 = vpack.c.bf16 %v2456_v41, %v2455_v40  ;;  %v2443_v55 = vld [vmem:[%s6010_s0 + $0xea0] sm:$0xff]  ;;  %v3807_v25 = vld [vmem:[%s6011_s1 + $0x150] sm:$0xff]  ;;  %v2432_v32 = vld [vmem:[%s6010_s0 + $0xe48] sm:$0xff] }
  0xd3   :  { %3670 = vmatpush3.bf16.msra.mxu1 %v3669_v42  ;;  %1784 = vmatprep.mubr.f32.mxu1 %v3793_v63  ;;  %v2441_v42 = vld [vmem:[%s6010_s0 + $0xe90] sm:$0xff]  ;;  %v2427_v63 = vld [vmem:[%s6010_s0 + $0xe20] sm:$0xff]  ;;  %v2450_v38 = vld [vmem:[%s6010_s0 + $0xed8] sm:$0xff] }
  0xd4   :  { %1695 = vmatmul.mubr.f32.gmra.mrb[58].mxu0 %v3794_v4  ;;  %3672 = vmatprep.subr.bf16.mxu1 %v3671_v52  ;;  %v3691_v50 = vpack.c.bf16 %v2442_v43, %v2441_v42  ;;  %v2458_v52 = vld [vmem:[%s6010_s0 + $0xf18] sm:$0xff]  ;;  %v2460_v4 = vld [vmem:[%s6010_s0 + $0xf28] sm:$0xff]  ;;  %v2449_v37 = vld [vmem:[%s6010_s0 + $0xed0] sm:$0xff] }
  0xd5   :  { %3642 = vmatpush3.bf16.msra.mxu0 %v3641_v56  ;;  %1854 = vmatprep.mubr.f32.mxu0 %v3796_v18  ;;  %v2444_v56 = vld [vmem:[%s6010_s0 + $0xea8] sm:$0xff]  ;;  %v3725_v62 = vpack.c.bf16 %v2458_v52, %v2457_v51  ;;  %v2481_v41 = vld [vmem:[%s6010_s0 + $0xfd0] sm:$0xff]  ;;  %v2482_v42 = vld [vmem:[%s6010_s0 + $0xfd8] sm:$0xff] }
  0xd6   :  { %1785 = vmatmul.mubr.f32.gmra.mrb[58].mxu1 %v3795_v7  ;;  %3644 = vmatprep.subr.bf16.mxu0 %v3643_v59  ;;  %v2475_v59 = vld [vmem:[%s6010_s0 + $0xfa0] sm:$0xff]  ;;  %v3695_v2 = vpack.c.bf16 %v2444_v56, %v2443_v55  ;;  %v2445_v7 = vld [vmem:[%s6010_s0 + $0xeb0] sm:$0xff]  ;;  %v3812_v45 = vld [vmem:[%s6011_s1 + $0x248] sm:$0xf]  ;;  %v3739_v52 = vpack.c.bf16 %v2482_v42, %v2481_v41 }
  0xd7   :  { %3674 = vmatpush3.bf16.msra.mxu1 %v3673_v58  ;;  %1944 = vmatprep.mubr.f32.mxu1 %v3797_v21  ;;  %v3693_v58 = vpack.c.bf16 %v2426_v49, %v2425_v48  ;;  %v3727_v6 = vpack.c.bf16 %v2476_v60, %v2475_v59  ;;  %v3806_v21 = vld [vmem:[%s6011_s1 + $0x140] sm:$0xff]  ;;  %v3811_v43 = vld [vmem:[%s6011_s1 + $0x1d0] sm:$0xff]  ;;  %v2434_v49 = vld [vmem:[%s6010_s0 + $0xe58] sm:$0xff] }
  0xd8   :  { %3676 = vmatprep.subr.bf16.mxu1 %v3675_v0  ;;  %v2428_v0 = vld [vmem:[%s6010_s0 + $0xe28] sm:$0xff]  ;;  %v2433_v48 = vld [vmem:[%s6010_s0 + $0xe50] sm:$0xff]  ;;  %v3813_v51 = vld [vmem:[%s6011_s1 + $0x258] sm:$0xf] }
  0xd9   :  { %3646 = vmatpush3.bf16.msra.mxu0 %v3645_v8  ;;  %v2446_v8 = vld [vmem:[%s6010_s0 + $0xeb8] sm:$0xff]  ;;  %v2452_v55 = vld [vmem:[%s6010_s0 + $0xee8] sm:$0xff]  ;;  %v3814_v56 = vld [vmem:[%s6011_s1 + $0x240] sm:$0xf]  ;;  %v3709_v60 = vpack.c.bf16 %v2434_v49, %v2433_v48 }
  0xda   :  { %3648 = vmatprep.subr.bf16.mxu0 %v3647_v10  ;;  %v3697_v10 = vpack.c.bf16 %v2428_v0, %v2427_v63  ;;  %v3699_v18 = vpack.c.bf16 %v2446_v8, %v2445_v7  ;;  %v3815_v59 = vld [vmem:[%s6011_s1 + $0x250] sm:$0xf]  ;;  %v2435_v63 = vld [vmem:[%s6010_s0 + $0xe60] sm:$0xff]  ;;  %v2436_v0 = vld [vmem:[%s6010_s0 + $0xe68] sm:$0xff] }
  0xdb   :  { %3678 = vmatpush3.bf16.msra.mxu1 %v3677_v9  ;;  %v3803_v9 = vld [vmem:[%s6011_s1 + $0xd0] sm:$0xff]  ;;  %v2454_v7 = vld [vmem:[%s6010_s0 + $0xef8] sm:$0xff]  ;;  %v3816_v8 = vld [vmem:[%s6011_s1 + $0x68] sm:$0xff]  ;;  %v3713_v16 = vpack.c.bf16 %v2436_v0, %v2435_v63 }
  0xdc   :  { %3680 = vmatprep.subr.bf16.mxu1 %v3679_v14  ;;  %v3729_v14 = vpack.c.bf16 %v2460_v4, %v2459_v3  ;;  %v2437_v20 = vld [vmem:[%s6010_s0 + $0xe70] sm:$0xff]  ;;  %v3818_v48 = vld [vmem:[%s6011_s1 + $0x60] sm:$0xff] }
  0xdd   :  { %3650 = vmatpush3.bf16.msra.mxu0 %v3649_v22  ;;  %v3731_v22 = vpack.c.bf16 %v2478_v12, %v2477_v11  ;;  %v2485_v11 = vld [vmem:[%s6010_s0 + $0xff0] sm:$0xff]  ;;  %v2486_v12 = vld [vmem:[%s6010_s0 + $0xff8] sm:$0xff] }
  0xde   :  { %3652 = vmatprep.subr.bf16.mxu0 %v3651_v24  ;;  %v2448_v24 = vld [vmem:[%s6010_s0 + $0xec8] sm:$0xff]  ;;  %v3823_v0 = vld [vmem:[%s6011_s1 + $0xf0] sm:$0xff] }
  0xdf   :  { %3682 = vmatpush3.bf16.msra.mxu1 %v3681_v23  ;;  %v2447_v23 = vld [vmem:[%s6010_s0 + $0xec0] sm:$0xff] }
  0xe0   :  { %3684 = vmatprep.subr.bf16.mxu1 %v3683_v28  ;;  %v2480_v28 = vld [vmem:[%s6010_s0 + $0xfc8] sm:$0xff] }
  0xe1   :  { %3654 = vmatpush3.bf16.msra.mxu0 %v3653_v34  ;;  %v3809_v34 = vld [vmem:[%s6011_s1 + $0x1d8] sm:$0xff]  ;;  %v3735_v40 = vpack.c.bf16 %v2480_v28, %v2479_v27 }
  0xe2   :  { %3688 = vmatprep.subr.bf16.mxu0 %v3687_v36  ;;  %v2464_v36 = vld [vmem:[%s6010_s0 + $0xf48] sm:$0xff] }
  0xe3   :  { %3686 = vmatpush3.bf16.msra.mxu1 %v3685_v35  ;;  %v3703_v35 = vpack.c.bf16 %v2448_v24, %v2447_v23  ;;  %v3737_v46 = vpack.c.bf16 %v2464_v36, %v2463_v33  ;;  %v3747_v23 = vpack.c.bf16 %v2486_v12, %v2485_v11  ;;  %v2469_v24 = vld [vmem:[%s6010_s0 + $0xf70] sm:$0xff]  ;;  %v3828_v11 = vld [vmem:[%s6011_s1 + $0x1e8] sm:$0xff] }
  0xe4   :  { %3720 = vmatprep.subr.bf16.mxu1 %v3719_v39  ;;  %1855 = vmatmul.mubr.f32.vlgmr.msra.gmra.mrb[60].mxu0 %v3798_v53  ;;  %v3810_v39 = vld [vmem:[%s6011_s1 + $0x1c0] sm:$0xff]  ;;  %v2466_v53 = vld [vmem:[%s6010_s0 + $0xf58] sm:$0xff] }
  0xe5   :  { %3690 = vmatpush3.bf16.msra.mxu0 %v3689_v44  ;;  %1859 = vmatprep.mubr.f32.mxu0 %v3800_v61  ;;  %v3705_v44 = vpack.c.bf16 %v2432_v32, %v2431_v31 }
  0xe6   :  { %1945 = vmatmul.mubr.f32.vlgmr.msra.gmra.mrb[60].mxu1 %v3799_v57  ;;  %3692 = vmatprep.subr.bf16.mxu0 %v3691_v50  ;;  %v2465_v50 = vld [vmem:[%s6010_s0 + $0xf50] sm:$0xff]  ;;  %v2483_v57 = vld [vmem:[%s6010_s0 + $0xfe0] sm:$0xff] }
  0xe7   :  { %3722 = vmatpush3.bf16.msra.mxu1 %v3721_v47  ;;  %1949 = vmatprep.mubr.f32.mxu1 %v3801_v1  ;;  %v3707_v47 = vpack.c.bf16 %v2450_v38, %v2449_v37  ;;  %v3741_v61 = vpack.c.bf16 %v2466_v53, %v2465_v50  ;;  %v2467_v1 = vld [vmem:[%s6010_s0 + $0xf60] sm:$0xff] }
  0xe8   :  { %1860 = vmatmul.mubr.f32.gmra.mrb[62].mxu0 %v3802_v5  ;;  %3724 = vmatprep.subr.bf16.mxu1 %v3723_v54  ;;  %v2451_v54 = vld [vmem:[%s6010_s0 + $0xee0] sm:$0xff]  ;;  %v2468_v5 = vld [vmem:[%s6010_s0 + $0xf68] sm:$0xff] }
  0xe9   :  { %3694 = vmatpush3.bf16.msra.mxu0 %v3693_v58  ;;  %1864 = vmatprep.mubr.f32.mxu0 %v3804_v13  ;;  %v2484_v58 = vld [vmem:[%s6010_s0 + $0xfe8] sm:$0xff]  ;;  %v3817_v13 = vld [vmem:[%s6011_s1 + $0x78] sm:$0xff] }
  0xea   :  { %1950 = vmatmul.mubr.f32.gmra.mrb[62].mxu1 %v3803_v9  ;;  %3696 = vmatprep.subr.bf16.mxu0 %v3695_v2  ;;  %v3743_v4 = vpack.c.bf16 %v2484_v58, %v2483_v57 }
  0xeb   :  { %3726 = vmatpush3.bf16.msra.mxu1 %v3725_v62  ;;  %1954 = vmatprep.mubr.f32.mxu1 %v3805_v17  ;;  %v3711_v62 = vpack.c.bf16 %v2452_v55, %v2451_v54 }
  0xec   :  { %1865 = vmatmul.mubr.f32.gmra.mrb[64].mxu0 %v3806_v21  ;;  %3728 = vmatprep.subr.bf16.mxu1 %v3727_v6  ;;  %v2453_v6 = vld [vmem:[%s6010_s0 + $0xef0] sm:$0xff]  ;;  %v2438_v21 = vld [vmem:[%s6010_s0 + $0xe78] sm:$0xff] }
  0xed   :  { %3698 = vmatpush3.bf16.msra.mxu0 %v3697_v10  ;;  %1869 = vmatprep.mubr.f32.mxu0 %v3808_v29  ;;  %v3715_v19 = vpack.c.bf16 %v2454_v7, %v2453_v6  ;;  %v3717_v31 = vpack.c.bf16 %v2438_v21, %v2437_v20  ;;  %v3825_v6 = vld [vmem:[%s6011_s1 + $0x178] sm:$0xff] }
  0xee   :  { %1955 = vmatmul.mubr.f32.gmra.mrb[64].mxu1 %v3807_v25  ;;  %3700 = vmatprep.subr.bf16.mxu0 %v3699_v18  ;;  %v3745_v18 = vpack.c.bf16 %v2468_v5, %v2467_v1  ;;  %v2470_v25 = vld [vmem:[%s6010_s0 + $0xf78] sm:$0xff]  ;;  %v3824_v1 = vld [vmem:[%s6011_s1 + $0x168] sm:$0xff] }
  0xef   :  { %3730 = vmatpush3.bf16.msra.mxu1 %v3729_v14  ;;  %1959 = vmatprep.mubr.f32.mxu1 %v3809_v34 }
  0xf0   :  { %1870 = vmatmul.mubr.f32.gmra.mrb[66].mxu0 %v3810_v39  ;;  %3732 = vmatprep.subr.bf16.mxu1 %v3731_v22 }
  0xf1   :  { %3702 = vmatpush3.bf16.msra.mxu0 %v3701_v26  ;;  %1874 = vmatprep.mubr.f32.mxu0 %v3812_v45 }
  0xf2   :  { %1960 = vmatmul.mubr.f32.gmra.mrb[66].mxu1 %v3811_v43  ;;  %3704 = vmatprep.subr.bf16.mxu0 %v3703_v35  ;;  %v3749_v35 = vpack.c.bf16 %v2470_v25, %v2469_v24 }
  0xf3   :  { %3734 = vmatpush3.bf16.msra.mxu1 %v3733_v30  ;;  %1964 = vmatprep.mubr.f32.mxu1 %v3813_v51  ;;  %v3819_v51 = vld [vmem:[%s6011_s1 + $0x70] sm:$0xff] }
  0xf4   :  { %1875 = vmatmul.mubr.f32.gmra.mrb[68].mxu0 %v3814_v56  ;;  %3736 = vmatprep.subr.bf16.mxu1 %v3735_v40  ;;  %v5808_v3 = vpop.permute.xlu0 %391  ;;  %v3821_v56 = vld [vmem:[%s6011_s1 + $0xf8] sm:$0xff] }
  0xf5   :  { %3706 = vmatpush3.bf16.msra.mxu0 %v3705_v44  ;;  %2034 = vmatprep.mubr.f32.mxu0 %v3816_v8 }
  0xf6   :  { %1965 = vmatmul.mubr.f32.gmra.mrb[68].mxu1 %v3815_v59  ;;  %3708 = vmatprep.subr.bf16.mxu0 %v3707_v47 }
  0xf7   :  { %3738 = vmatpush3.bf16.msra.mxu1 %v3737_v46  ;;  %v2519_v2 = vpop.f32.mrb[0].mxu0  ;;  %2124 = vmatprep.mubr.f32.mxu1 %v3817_v13  ;;  %v3829_v13 = vld [vmem:[%s6011_s1 + $0x1f8] sm:$0xff] }
  0xf8   :  { %3740 = vmatprep.subr.bf16.mxu1 %v3739_v52  ;;  %v2520_v9 = vpop.f32.mrb[1].mxu0  ;;  %v5848_v34 = vpop.permute.xlu1 %401  ;;  %v3820_v52 = vld [vmem:[%s6011_s1 + $0xe8] sm:$0xff] }
  0xf9   :  { %v2566_v10 = vpop.f32.mrb[0].mxu1  ;;  %v2521_v14 = vadd.f32 %v2520_v9, %v2519_v2  ;;  %3710 = vmatpush3.bf16.msra.mxu0 %v3709_v60  ;;  %v5844_v27 = vpop.permute.xlu0 %396  ;;  %v3826_v9 = vld [vmem:[%s6011_s1 + $0x160] sm:$0xff] }
  0xfa   :  { %v2567_v15 = vpop.f32.mrb[1].mxu1  ;;  %3712 = vmatprep.subr.bf16.mxu0 %v3711_v62 }
  0xfb   :  { %v2568_v17 = vadd.f32 %v2567_v15, %v2566_v10  ;;  %3742 = vmatpush3.bf16.msra.mxu1 %v3741_v61  ;;  %v481_v22 = vadd.f32 %v2521_v14, %v5808_v3  ;;  %v2522_v26 = vpop.f32.mrb[2].mxu0  ;;  %v3822_v61 = vld [vmem:[%s6011_s1 + $0xe0] sm:$0xff]  ;;  %v3827_v10 = vld [vmem:[%s6011_s1 + $0x170] sm:$0xff] }
  0xfc   :  { %3744 = vmatprep.subr.bf16.mxu1 %v3743_v4  ;;  %v2523_v28 = vpop.f32.mrb[3].mxu0  ;;  %v5854_v47 = vpop.permute.xlu1 %406  ;;  %v3830_v14 = vld [vmem:[%s6011_s1 + $0x1e0] sm:$0xff]  ;;  %v3831_v15 = vld [vmem:[%s6011_s1 + $0x1f0] sm:$0xff] }
  0xfd   :  { %v2569_v29 = vpop.f32.mrb[2].mxu1  ;;  %v5846_v30 = vadd.f32 %v2568_v17, %v481_v22  ;;  %3714 = vmatpush3.bf16.msra.mxu0 %v3713_v16  ;;  %v2524_v32 = vadd.f32 %v2523_v28, %v2522_v26  ;;  %v5871_v60 = vpop.permute.xlu0 %411  ;;  %v3832_v16 = vld [vmem:[%s6011_s1 + $0x268] sm:$0xf]  ;;  %v3833_v17 = vld [vmem:[%s6011_s1 + $0x278] sm:$0xf] }
  0xfe   :  { %v2570_v33 = vpop.f32.mrb[3].mxu1  ;;  %3716 = vmatprep.subr.bf16.mxu0 %v3715_v19  ;;  %v3835_v19 = vld [vmem:[%s6011_s1 + $0x270] sm:$0xf] }
  0xff   :  { %3746 = vmatpush3.bf16.msra.mxu1 %v3745_v18  ;;  %v2571_v36 = vadd.f32 %v2570_v33, %v2569_v29  ;;  %v486_v37 = vadd.f32 %v2524_v32, %v5844_v27  ;;  %v2525_v38 = vpop.f32.mrb[4].mxu0  ;;  %v3834_v18 = vld [vmem:[%s6011_s1 + $0x260] sm:$0xf] }
 0x100   :  { %3748 = vmatprep.subr.bf16.mxu1 %v3747_v23  ;;  %v2526_v39 = vpop.f32.mrb[5].mxu0 }
 0x101   :  { %v2572_v40 = vpop.f32.mrb[4].mxu1  ;;  %3718 = vmatpush3.bf16.msra.mxu0 %v3717_v31  ;;  %v5851_v41 = vadd.f32 %v2571_v36, %v486_v37  ;;  %v2527_v42 = vadd.f32 %v2526_v39, %v2525_v38 }
 0x102   :  { %v2573_v43 = vpop.f32.mrb[5].mxu1 }
 0x103   :  { %3750 = vmatpush3.bf16.msra.mxu1 %v3749_v35  ;;  %v2574_v44 = vadd.f32 %v2573_v43, %v2572_v40  ;;  %v491_v45 = vadd.f32 %v2527_v42, %v5848_v34  ;;  %v2528_v46 = vpop.f32.mrb[6].mxu0 }
 0x104   :  { %2035 = vmatmul.mubr.f32.vlgmr.msra.gmra.mrb[70].mxu0 %v3818_v48  ;;  %v2529_v49 = vpop.f32.mrb[7].mxu0 }
 0x105   :  { %v2575_v50 = vpop.f32.mrb[6].mxu1  ;;  %2039 = vmatprep.mubr.f32.mxu0 %v3820_v52  ;;  %v5865_v53 = vadd.f32 %v2574_v44, %v491_v45  ;;  %v2530_v54 = vadd.f32 %v2529_v49, %v2528_v46 }
 0x106   :  { %2125 = vmatmul.mubr.f32.vlgmr.msra.gmra.mrb[70].mxu1 %v3819_v51  ;;  %v2576_v55 = vpop.f32.mrb[7].mxu1 }
 0x107   :  { %2129 = vmatprep.mubr.f32.mxu1 %v3821_v56  ;;  %v2577_v57 = vadd.f32 %v2576_v55, %v2575_v50  ;;  %v496_v58 = vadd.f32 %v2530_v54, %v5854_v47  ;;  %v2531_v59 = vpop.f32.mrb[8].mxu0 }
 0x108   :  { %2040 = vmatmul.mubr.f32.gmra.mrb[72].mxu0 %v3822_v61  ;;  %v2532_v62 = vpop.f32.mrb[9].mxu0 }
 0x109   :  { %v2578_v63 = vpop.f32.mrb[8].mxu1  ;;  %2044 = vmatprep.mubr.f32.mxu0 %v3824_v1  ;;  %v586_v2 = vadd.f32 %v2577_v57, %v496_v58  ;;  %v2533_v4 = vadd.f32 %v2532_v62, %v2531_v59 }
 0x10a   :  { %2130 = vmatmul.mubr.f32.gmra.mrb[72].mxu1 %v3823_v0  ;;  %v2579_v5 = vpop.f32.mrb[9].mxu1 }
 0x10b   :  { %2134 = vmatprep.mubr.f32.mxu1 %v3825_v6  ;;  %v2580_v7 = vadd.f32 %v2579_v5, %v2578_v63  ;;  %v501_v8 = vadd.f32 %v2533_v4, %v5871_v60 }
 0x10c   :  { %2045 = vmatmul.mubr.f32.gmra.mrb[74].mxu0 %v3826_v9 }
 0x10d   :  { %2049 = vmatprep.mubr.f32.mxu0 %v3828_v11  ;;  %v591_v12 = vadd.f32 %v2580_v7, %v501_v8 }
 0x10e   :  { %2135 = vmatmul.mubr.f32.gmra.mrb[74].mxu1 %v3827_v10 }
 0x10f   :  { %2139 = vmatprep.mubr.f32.mxu1 %v3829_v13 }
 0x110   :  { %2050 = vmatmul.mubr.f32.gmra.mrb[76].mxu0 %v3830_v14 }
 0x111   :  { %2054 = vmatprep.mubr.f32.mxu0 %v3832_v16 }
 0x112   :  { %2140 = vmatmul.mubr.f32.gmra.mrb[76].mxu1 %v3831_v15 }
 0x113   :  { %2144 = vmatprep.mubr.f32.mxu1 %v3833_v17 }
 0x114   :  { %2055 = vmatmul.mubr.f32.gmra.mrb[78].mxu0 %v3834_v18 }
 0x116   :  { %2145 = vmatmul.mubr.f32.gmra.mrb[78].mxu1 %v3835_v19 }
 0x117   :  { %v2613_v20 = vpop.f32.mrb[10].mxu0 }
 0x118   :  { %v2614_v21 = vpop.f32.mrb[11].mxu0 }
 0x119   :  { %v2660_v22 = vpop.f32.mrb[10].mxu1  ;;  %v2615_v23 = vadd.f32 %v2614_v21, %v2613_v20 }
 0x11a   :  { %v2661_v24 = vpop.f32.mrb[11].mxu1 }
 0x11b   :  { %v2662_v25 = vadd.f32 %v2661_v24, %v2660_v22  ;;  %v661_v26 = vadd.f32 %v2615_v23, %v5846_v30  ;;  %v2616_v28 = vpop.f32.mrb[12].mxu0 }
 0x11c   :  { %v2617_v29 = vpop.f32.mrb[13].mxu0 }
 0x11d   :  { %v2663_v31 = vpop.f32.mrb[12].mxu1  ;;  %v751_v32 = vadd.f32 %v2662_v25, %v661_v26  ;;  %v2618_v33 = vadd.f32 %v2617_v29, %v2616_v28 }
 0x11e   :  { %v2664_v35 = vpop.f32.mrb[13].mxu1 }
 0x11f   :  { %v2665_v36 = vadd.f32 %v2664_v35, %v2663_v31  ;;  %v666_v37 = vadd.f32 %v2618_v33, %v5851_v41  ;;  %v2619_v38 = vpop.f32.mrb[14].mxu0 }
 0x120   :  { %v2620_v39 = vpop.f32.mrb[15].mxu0 }
 0x121   :  { %v2666_v40 = vpop.f32.mrb[14].mxu1  ;;  %v756_v42 = vadd.f32 %v2665_v36, %v666_v37  ;;  %v2621_v43 = vadd.f32 %v2620_v39, %v2619_v38 }
 0x122   :  { %v2667_v44 = vpop.f32.mrb[15].mxu1 }
 0x123   :  { %v2668_v45 = vadd.f32 %v2667_v44, %v2666_v40  ;;  %v671_v46 = vadd.f32 %v2621_v43, %v5865_v53  ;;  %v2622_v48 = vpop.f32.mrb[16].mxu0 }
 0x124   :  { %v2623_v30 = vpop.f32.mrb[17].mxu0 }
 0x125   :  { %v2669_v49 = vpop.f32.mrb[16].mxu1  ;;  %v761_v50 = vadd.f32 %v2668_v45, %v671_v46  ;;  %v2624_v51 = vadd.f32 %v2623_v30, %v2622_v48 }
 0x126   :  { %v2670_v52 = vpop.f32.mrb[17].mxu1 }
 0x127   :  { %v2671_v54 = vadd.f32 %v2670_v52, %v2669_v49  ;;  %v676_v55 = vadd.f32 %v2624_v51, %v586_v2  ;;  %v2625_v56 = vpop.f32.mrb[18].mxu0 }
 0x128   :  { %v2626_v57 = vpop.f32.mrb[19].mxu0 }
 0x129   :  { %v2672_v41 = vpop.f32.mrb[18].mxu1  ;;  %v766_v58 = vadd.f32 %v2671_v54, %v676_v55  ;;  %v2627_v59 = vadd.f32 %v2626_v57, %v2625_v56  ;;  %v117_v56 = vlaneseq }
 0x12a   :  { %v2673_v61 = vpop.f32.mrb[19].mxu1 }
 0x12b   :  { %v2674_v62 = vadd.f32 %v2673_v61, %v2672_v41  ;;  %v681_v63 = vadd.f32 %v2627_v59, %v591_v12 }
 0x12d   :  { %v771_v0 = vadd.f32 %v2674_v62, %v681_v63 }
 0x137   :  { %v2707_v1 = vpop.f32.mrb[20].mxu0 }
 0x138   :  { %v2708_v4 = vpop.f32.mrb[21].mxu0 }
 0x139   :  { %v2754_v53 = vpop.f32.mrb[20].mxu1  ;;  %v2709_v5 = vadd.f32 %v2708_v4, %v2707_v1  ;;  %v118_v4 = vshrl.u32 %v117_v56, 7 }
 0x13a   :  { %v2755_v6 = vpop.f32.mrb[21].mxu1 }
 0x13b   :  { %v2756_v7 = vadd.f32 %v2755_v6, %v2754_v53  ;;  %v841_v8 = vadd.f32 %v2709_v5, %v751_v32  ;;  %v2710_v9 = vpop.f32.mrb[22].mxu0 }
 0x13c   :  { %v2711_v10 = vpop.f32.mrb[23].mxu0 }
 0x13d   :  { %v2757_v11 = vpop.f32.mrb[22].mxu1  ;;  %v931_v2 = vadd.f32 %v2756_v7, %v841_v8  ;;  %v2712_v13 = vadd.f32 %v2711_v10, %v2710_v9 }
 0x13e   :  { %v2758_v14 = vpop.f32.mrb[23].mxu1 }
 0x13f   :  { %v2759_v15 = vadd.f32 %v2758_v14, %v2757_v11  ;;  %v846_v16 = vadd.f32 %v2712_v13, %v756_v42  ;;  %v2713_v17 = vpop.f32.mrb[24].mxu0  ;;  %v122_v14 = vadd.s32 32, %v118_v4 }
 0x140   :  { %v2714_v18 = vpop.f32.mrb[25].mxu0 }
 0x141   :  { %v2760_v19 = vpop.f32.mrb[24].mxu1  ;;  %v936_v12 = vadd.f32 %v2759_v15, %v846_v16  ;;  %v2715_v20 = vadd.f32 %v2714_v18, %v2713_v17  ;;  %vm127_vm2 = vcmp.lt.s32.totalorder %v122_v14, 34 }
 0x142   :  { %v2761_v21 = vpop.f32.mrb[25].mxu1 }
 0x143   :  { %v2762_v22 = vadd.f32 %v2761_v21, %v2760_v19  ;;  %v851_v23 = vadd.f32 %v2715_v20, %v761_v50  ;;  %v2716_v24 = vpop.f32.mrb[26].mxu0 }
 0x144   :  { %v2717_v25 = vpop.f32.mrb[27].mxu0 }
 0x145   :  { %v2763_v26 = vpop.f32.mrb[26].mxu1  ;;  %v941_v28 = vadd.f32 %v2762_v22, %v851_v23  ;;  %v2718_v29 = vadd.f32 %v2717_v25, %v2716_v24  ;;  %v3837_v24 = vmov 0.0  }
 0x146   :  { %v2764_v31 = vpop.f32.mrb[27].mxu1  ;;  %21 = vst.msk [vmem:[#allocation2] sm:$0xff] %vm20_vm1, %v3837_v24  ;;  %22 = vst.msk [vmem:[#allocation2 + $0x8] sm:$0xff] %vm20_vm1, %v3837_v24 }
 0x147   :  { %v2765_v32 = vadd.f32 %v2764_v31, %v2763_v26  ;;  %v856_v33 = vadd.f32 %v2718_v29, %v766_v58  ;;  %v2719_v35 = vpop.f32.mrb[28].mxu0  ;;  %23 = vst.msk [vmem:[#allocation2 + $0x10] sm:$0xff] %vm20_vm1, %v3837_v24  ;;  %24 = vst.msk [vmem:[#allocation2 + $0x18] sm:$0xff] %vm20_vm1, %v3837_v24 }
 0x148   :  { %v2720_v36 = vpop.f32.mrb[29].mxu0  ;;  %27 = vst.msk [vmem:[#allocation2 + $0x28] sm:$0xff] %vm20_vm1, %v3837_v24  ;;  %28 = vst.msk [vmem:[#allocation2 + $0x30] sm:$0xff] %vm20_vm1, %v3837_v24 }
 0x149   :  { %v2766_v37 = vpop.f32.mrb[28].mxu1  ;;  %v946_v38 = vadd.f32 %v2765_v32, %v856_v33  ;;  %v2721_v39 = vadd.f32 %v2720_v36, %v2719_v35  ;;  %29 = vst.msk [vmem:[#allocation2 + $0x38] sm:$0xff] %vm20_vm1, %v3837_v24  ;;  %30 = vst.msk [vmem:[#allocation2 + $0x40] sm:$0xff] %vm20_vm1, %v3837_v24  ;;  %v3838_v35 = vmov -inf  }
 0x14a   :  { %v2767_v40 = vpop.f32.mrb[29].mxu1  ;;  %v5934_v36 = vsel %vm127_vm2, 0.0, %v3838_v35  ;;  %26 = vst.msk [vmem:[#allocation2 + $0x20] sm:$0xf] %vm25_vm4, %v3837_v24  ;;  %31 = vst.msk [vmem:[#allocation2 + $0x48] sm:$0xf] %vm25_vm4, %v3837_v24 }
 0x14b   :  { %v2768_v42 = vadd.f32 %v2767_v40, %v2766_v37  ;;  %v861_v43 = vadd.f32 %v2721_v39, %v771_v0 }
 0x14d   :  { %v5919_v44 = vadd.f32 %v2768_v42, %v861_v43 }
 0x157   :  { %v2801_v45 = vpop.f32.mrb[30].mxu0 }
 0x158   :  { %v2802_v46 = vpop.f32.mrb[31].mxu0 }
 0x159   :  { %v2848_v48 = vpop.f32.mrb[30].mxu1  ;;  %v2803_v30 = vadd.f32 %v2802_v46, %v2801_v45 }
 0x15a   :  { %v2849_v49 = vpop.f32.mrb[31].mxu1 }
 0x15b   :  { %v2850_v50 = vadd.f32 %v2849_v49, %v2848_v48  ;;  %v1021_v51 = vadd.f32 %v2803_v30, %v931_v2  ;;  %v2804_v52 = vpop.f32.mrb[32].mxu0 }
 0x15c   :  { %v2805_v54 = vpop.f32.mrb[33].mxu0 }
 0x15d   :  { %v2851_v55 = vpop.f32.mrb[32].mxu1  ;;  %v1111_v57 = vadd.f32 %v2850_v50, %v1021_v51  ;;  %v2806_v41 = vadd.f32 %v2805_v54, %v2804_v52 }
 0x15e   :  { %v2852_v58 = vpop.f32.mrb[33].mxu1 }
 0x15f   :  { %v2853_v59 = vadd.f32 %v2852_v58, %v2851_v55  ;;  %v1026_v61 = vadd.f32 %v2806_v41, %v936_v12  ;;  %v2807_v62 = vpop.f32.mrb[34].mxu0  ;;  %v1134_v63 = vmax.f32 %v1111_v57, 0.0 }
 0x160   :  { %v2808_v0 = vpop.f32.mrb[35].mxu0 }
 0x161   :  { %v2854_v1 = vpop.f32.mrb[34].mxu1  ;;  %v1116_v53 = vadd.f32 %v2853_v59, %v1026_v61  ;;  %v2809_v5 = vadd.f32 %v2808_v0, %v2807_v62  ;;  %v1145_v7 = vsel %vm1144_vm0, %v1134_v63, 0.0 }
 0x162   :  { %v2855_v6 = vpop.f32.mrb[35].mxu1  ;;  %1146 = vadd.xlane.f32.xlu1 %v1145_v7 }
 0x163   :  { %v2856_v8 = vadd.f32 %v2855_v6, %v2854_v1  ;;  %v1031_v9 = vadd.f32 %v2809_v5, %v941_v28  ;;  %v2810_v10 = vpop.f32.mrb[36].mxu0  ;;  %v1135_v11 = vmax.f32 %v1116_v53, 0.0 }
 0x164   :  { %v2811_v2 = vpop.f32.mrb[37].mxu0 }
 0x165   :  { %v2857_v13 = vpop.f32.mrb[36].mxu1  ;;  %v1121_v15 = vadd.f32 %v2856_v8, %v1031_v9  ;;  %v2812_v16 = vadd.f32 %v2811_v2, %v2810_v10  ;;  %v1148_v18 = vsel %vm1144_vm0, %v1135_v11, 0.0 }
 0x166   :  { %v2858_v17 = vpop.f32.mrb[37].mxu1  ;;  %1149 = vadd.xlane.f32.xlu0 %v1148_v18 }
 0x167   :  { %v2859_v19 = vadd.f32 %v2858_v17, %v2857_v13  ;;  %v1036_v12 = vadd.f32 %v2812_v16, %v946_v38  ;;  %v2813_v20 = vpop.f32.mrb[38].mxu0  ;;  %v1136_v21 = vmax.f32 %v1121_v15, 0.0 }
 0x168   :  { %v2814_v22 = vpop.f32.mrb[39].mxu0 }
 0x169   :  { %v2860_v23 = vpop.f32.mrb[38].mxu1  ;;  %v1126_v25 = vadd.f32 %v2859_v19, %v1036_v12  ;;  %v2815_v26 = vadd.f32 %v2814_v22, %v2813_v20  ;;  %v1151_v29 = vsel %vm1144_vm0, %v1136_v21, 0.0 }
 0x16a   :  { %v2861_v28 = vpop.f32.mrb[39].mxu1  ;;  %1152 = vadd.xlane.f32.xlu0 %v1151_v29 }
 0x16b   :  { %v2862_v31 = vadd.f32 %v2861_v28, %v2860_v23  ;;  %v1041_v32 = vadd.f32 %v2815_v26, %v5919_v44  ;;  %v1137_v33 = vmax.f32 %v1126_v25, 0.0 }
 0x16d   :  { %v1131_v37 = vadd.f32 %v2862_v31, %v1041_v32  ;;  %v1154_v38 = vsel %vm1144_vm0, %v1137_v33, 0.0 }
 0x16e   :  { %1155 = vadd.xlane.f32.xlu1 %v1154_v38 }
 0x16f   :  { %v1138_v39 = vmax.f32 %v1131_v37, %v5934_v36 }
 0x171   :  { %v1158_v40 = vsel %vm1157_vm3, %v1138_v39, 0.0 }
 0x172   :  { %1159 = vadd.xlane.f32.xlu0 %v1158_v40 }
 0x177   :  { %v2895_v42 = vpop.f32.mrb[40].mxu0 }
 0x178   :  { %v2896_v43 = vpop.f32.mrb[41].mxu0 }
 0x179   :  { %v2942_v45 = vpop.f32.mrb[40].mxu1  ;;  %v2897_v44 = vadd.f32 %v2896_v43, %v2895_v42 }
 0x17a   :  { %v2943_v46 = vpop.f32.mrb[41].mxu1 }
 0x17b   :  { %v2944_v48 = vadd.f32 %v2943_v46, %v2942_v45  ;;  %v1497_v30 = vadd.f32 %v2897_v44, %v5808_v3  ;;  %v2898_v49 = vpop.f32.mrb[42].mxu0 }
 0x17c   :  { %v2899_v50 = vpop.f32.mrb[43].mxu0 }
 0x17d   :  { %v2945_v51 = vpop.f32.mrb[42].mxu1  ;;  %v1587_v52 = vadd.f32 %v2944_v48, %v1497_v30  ;;  %v2900_v54 = vadd.f32 %v2899_v50, %v2898_v49 }
 0x17e   :  { %v2946_v55 = vpop.f32.mrb[43].mxu1 }
 0x17f   :  { %v2947_v56 = vadd.f32 %v2946_v55, %v2945_v51  ;;  %v1502_v57 = vadd.f32 %v2900_v54, %v5844_v27  ;;  %v2901_v41 = vpop.f32.mrb[44].mxu0 }
 0x180   :  { %v2902_v58 = vpop.f32.mrb[45].mxu0 }
 0x181   :  { %v2948_v59 = vpop.f32.mrb[44].mxu1  ;;  %v1592_v61 = vadd.f32 %v2947_v56, %v1502_v57  ;;  %v2903_v62 = vadd.f32 %v2902_v58, %v2901_v41 }
 0x182   :  { %v2949_v63 = vpop.f32.mrb[45].mxu1 }
 0x183   :  { %v2950_v0 = vadd.f32 %v2949_v63, %v2948_v59  ;;  %v1507_v1 = vadd.f32 %v2903_v62, %v5848_v34  ;;  %v2904_v4 = vpop.f32.mrb[46].mxu0 }
 0x184   :  { %v2905_v3 = vpop.f32.mrb[47].mxu0 }
 0x185   :  { %v2951_v53 = vpop.f32.mrb[46].mxu1  ;;  %v1597_v5 = vadd.f32 %v2950_v0, %v1507_v1  ;;  %v2906_v6 = vadd.f32 %v2905_v3, %v2904_v4 }
 0x186   :  { %v2952_v7 = vpop.f32.mrb[47].mxu1 }
 0x187   :  { %v2953_v8 = vadd.f32 %v2952_v7, %v2951_v53  ;;  %v1512_v9 = vadd.f32 %v2906_v6, %v5854_v47  ;;  %v2907_v10 = vpop.f32.mrb[48].mxu0 }
 0x188   :  { %v2908_v27 = vpop.f32.mrb[49].mxu0 }
 0x189   :  { %v2954_v11 = vpop.f32.mrb[48].mxu1  ;;  %v1602_v2 = vadd.f32 %v2953_v8, %v1512_v9  ;;  %v2909_v13 = vadd.f32 %v2908_v27, %v2907_v10 }
 0x18a   :  { %v2955_v14 = vpop.f32.mrb[49].mxu1 }
 0x18b   :  { %v2956_v15 = vadd.f32 %v2955_v14, %v2954_v11  ;;  %v1517_v16 = vadd.f32 %v2909_v13, %v5871_v60 }
 0x18d   :  { %v1607_v17 = vadd.f32 %v2956_v15, %v1517_v16 }
 0x197   :  { %v2989_v34 = vpop.f32.mrb[50].mxu0 }
 0x198   :  { %v2990_v18 = vpop.f32.mrb[51].mxu0 }
 0x199   :  { %v3036_v19 = vpop.f32.mrb[50].mxu1  ;;  %v2991_v12 = vadd.f32 %v2990_v18, %v2989_v34 }
 0x19a   :  { %v3037_v20 = vpop.f32.mrb[51].mxu1 }
 0x19b   :  { %v3038_v21 = vadd.f32 %v3037_v20, %v3036_v19  ;;  %v1677_v22 = vadd.f32 %v2991_v12, %v1587_v52  ;;  %v2992_v23 = vpop.f32.mrb[52].mxu0 }
 0x19c   :  { %v2993_v24 = vpop.f32.mrb[53].mxu0 }
 0x19d   :  { %v3039_v47 = vpop.f32.mrb[52].mxu1  ;;  %v1767_v25 = vadd.f32 %v3038_v21, %v1677_v22  ;;  %v2994_v26 = vadd.f32 %v2993_v24, %v2992_v23 }
 0x19e   :  { %v3040_v28 = vpop.f32.mrb[53].mxu1 }
 0x19f   :  { %v3041_v29 = vadd.f32 %v3040_v28, %v3039_v47  ;;  %v1682_v31 = vadd.f32 %v2994_v26, %v1592_v61  ;;  %v2995_v32 = vpop.f32.mrb[54].mxu0 }
 0x1a0   :  { %v2996_v33 = vpop.f32.mrb[55].mxu0 }
 0x1a1   :  { %v3042_v35 = vpop.f32.mrb[54].mxu1  ;;  %v1772_v60 = vadd.f32 %v3041_v29, %v1682_v31  ;;  %v2997_v37 = vadd.f32 %v2996_v33, %v2995_v32 }
 0x1a2   :  { %v3043_v38 = vpop.f32.mrb[55].mxu1 }
 0x1a3   :  { %v3044_v39 = vadd.f32 %v3043_v38, %v3042_v35  ;;  %v1687_v40 = vadd.f32 %v2997_v37, %v1597_v5  ;;  %v2998_v42 = vpop.f32.mrb[56].mxu0 }
 0x1a4   :  { %v2999_v43 = vpop.f32.mrb[57].mxu0 }
 0x1a5   :  { %v3045_v45 = vpop.f32.mrb[56].mxu1  ;;  %v1777_v44 = vadd.f32 %v3044_v39, %v1687_v40  ;;  %v3000_v46 = vadd.f32 %v2999_v43, %v2998_v42 }
 0x1a6   :  { %v3046_v48 = vpop.f32.mrb[57].mxu1 }
 0x1a7   :  { %v3047_v30 = vadd.f32 %v3046_v48, %v3045_v45  ;;  %v1692_v49 = vadd.f32 %v3000_v46, %v1602_v2  ;;  %v3001_v50 = vpop.f32.mrb[58].mxu0 }
 0x1a8   :  { %v3002_v51 = vpop.f32.mrb[59].mxu0 }
 0x1a9   :  { %v3048_v52 = vpop.f32.mrb[58].mxu1  ;;  %v1782_v54 = vadd.f32 %v3047_v30, %v1692_v49  ;;  %v3003_v55 = vadd.f32 %v3002_v51, %v3001_v50 }
 0x1aa   :  { %v3049_v56 = vpop.f32.mrb[59].mxu1 }
 0x1ab   :  { %v3050_v57 = vadd.f32 %v3049_v56, %v3048_v52  ;;  %v1697_v41 = vadd.f32 %v3003_v55, %v1607_v17 }
 0x1ad   :  { %v1787_v58 = vadd.f32 %v3050_v57, %v1697_v41 }
 0x1b7   :  { %v3083_v59 = vpop.f32.mrb[60].mxu0 }
 0x1b8   :  { %v3084_v61 = vpop.f32.mrb[61].mxu0 }
 0x1b9   :  { %v3130_v62 = vpop.f32.mrb[60].mxu1  ;;  %v3085_v63 = vadd.f32 %v3084_v61, %v3083_v59 }
 0x1ba   :  { %v3131_v0 = vpop.f32.mrb[61].mxu1 }
 0x1bb   :  { %v3132_v1 = vadd.f32 %v3131_v0, %v3130_v62  ;;  %v1857_v4 = vadd.f32 %v3085_v63, %v1767_v25  ;;  %v3086_v3 = vpop.f32.mrb[62].mxu0 }
 0x1bc   :  { %v3087_v53 = vpop.f32.mrb[63].mxu0 }
 0x1bd   :  { %v3133_v5 = vpop.f32.mrb[62].mxu1  ;;  %v1947_v6 = vadd.f32 %v3132_v1, %v1857_v4  ;;  %v3088_v7 = vadd.f32 %v3087_v53, %v3086_v3 }
 0x1be   :  { %v3134_v8 = vpop.f32.mrb[63].mxu1 }
 0x1bf   :  { %v3135_v9 = vadd.f32 %v3134_v8, %v3133_v5  ;;  %v1862_v10 = vadd.f32 %v3088_v7, %v1772_v60  ;;  %v3089_v27 = vpop.f32.mrb[64].mxu0 }
 0x1c0   :  { %v3090_v11 = vpop.f32.mrb[65].mxu0 }
 0x1c1   :  { %v3136_v2 = vpop.f32.mrb[64].mxu1  ;;  %v1952_v13 = vadd.f32 %v3135_v9, %v1862_v10  ;;  %v3091_v14 = vadd.f32 %v3090_v11, %v3089_v27 }
 0x1c2   :  { %v3137_v15 = vpop.f32.mrb[65].mxu1 }
 0x1c3   :  { %v3138_v16 = vadd.f32 %v3137_v15, %v3136_v2  ;;  %v1867_v17 = vadd.f32 %v3091_v14, %v1777_v44  ;;  %v3092_v34 = vpop.f32.mrb[66].mxu0 }
 0x1c4   :  { %v3093_v18 = vpop.f32.mrb[67].mxu0 }
 0x1c5   :  { %v3139_v19 = vpop.f32.mrb[66].mxu1  ;;  %v1957_v12 = vadd.f32 %v3138_v16, %v1867_v17  ;;  %v3094_v20 = vadd.f32 %v3093_v18, %v3092_v34 }
 0x1c6   :  { %v3140_v21 = vpop.f32.mrb[67].mxu1 }
 0x1c7   :  { %v3141_v22 = vadd.f32 %v3140_v21, %v3139_v19  ;;  %v1872_v23 = vadd.f32 %v3094_v20, %v1782_v54  ;;  %v3095_v24 = vpop.f32.mrb[68].mxu0  ;;  %v1139_v19 = vld [vmem:[#allocation2] sm:$0xff] }
 0x1c8   :  { %v3096_v47 = vpop.f32.mrb[69].mxu0 }
 0x1c9   :  { %v3142_v25 = vpop.f32.mrb[68].mxu1  ;;  %v1962_v26 = vadd.f32 %v3141_v22, %v1872_v23  ;;  %v3097_v28 = vadd.f32 %v3096_v47, %v3095_v24  ;;  %v1140_v23 = vld [vmem:[#allocation2 + $0x8] sm:$0xff] }
 0x1ca   :  { %v3143_v29 = vpop.f32.mrb[69].mxu1 }
 0x1cb   :  { %v3144_v31 = vadd.f32 %v3143_v29, %v3142_v25  ;;  %v1877_v32 = vadd.f32 %v3097_v28, %v1787_v58  ;;  %v1141_v25 = vld [vmem:[#allocation2 + $0x10] sm:$0xff] }
 0x1cd   :  { %v1967_v33 = vadd.f32 %v3144_v31, %v1877_v32  ;;  %v1142_v31 = vld [vmem:[#allocation2 + $0x18] sm:$0xff] }
 0x1d7   :  { %v3177_v35 = vpop.f32.mrb[70].mxu0 }
 0x1d8   :  { %v3178_v60 = vpop.f32.mrb[71].mxu0 }
 0x1d9   :  { %v3224_v37 = vpop.f32.mrb[70].mxu1  ;;  %v3179_v38 = vadd.f32 %v3178_v60, %v3177_v35  ;;  %v1143_v60 = vld [vmem:[#allocation2 + $0x20] sm:$0xf] }
 0x1da   :  { %v3225_v39 = vpop.f32.mrb[71].mxu1 }
 0x1db   :  { %v3226_v40 = vadd.f32 %v3225_v39, %v3224_v37  ;;  %v2037_v42 = vadd.f32 %v3179_v38, %v1947_v6  ;;  %v3180_v43 = vpop.f32.mrb[72].mxu0 }
 0x1dc   :  { %v3181_v45 = vpop.f32.mrb[73].mxu0 }
 0x1dd   :  { %v3227_v44 = vpop.f32.mrb[72].mxu1  ;;  %v2127_v46 = vadd.f32 %v3226_v40, %v2037_v42  ;;  %v3182_v48 = vadd.f32 %v3181_v45, %v3180_v43 }
 0x1de   :  { %v3228_v30 = vpop.f32.mrb[73].mxu1 }
 0x1df   :  { %v3229_v49 = vadd.f32 %v3228_v30, %v3227_v44  ;;  %v2042_v50 = vadd.f32 %v3182_v48, %v1952_v13  ;;  %v3183_v51 = vpop.f32.mrb[74].mxu0  ;;  %v2150_v52 = vmax.f32 %v2127_v46, 0.0  ;;  %v2156_v48 = vld [vmem:[#allocation2 + $0x28] sm:$0xff] }
 0x1e0   :  { %v3184_v54 = vpop.f32.mrb[75].mxu0 }
 0x1e1   :  { %v3230_v55 = vpop.f32.mrb[74].mxu1  ;;  %v2132_v56 = vadd.f32 %v3229_v49, %v2042_v50  ;;  %v3185_v57 = vadd.f32 %v3184_v54, %v3183_v51  ;;  %v2161_v58 = vsel %vm1144_vm0, %v2150_v52, 0.0  ;;  %v2157_v50 = vld [vmem:[#allocation2 + $0x30] sm:$0xff]  ;;  %v2158_v54 = vld [vmem:[#allocation2 + $0x38] sm:$0xff] }
 0x1e2   :  { %v3231_v41 = vpop.f32.mrb[75].mxu1  ;;  %2162 = vadd.xlane.f32.xlu1 %v2161_v58 }
 0x1e3   :  { %v3232_v59 = vadd.f32 %v3231_v41, %v3230_v55  ;;  %v2047_v61 = vadd.f32 %v3185_v57, %v1957_v12  ;;  %v3186_v62 = vpop.f32.mrb[76].mxu0  ;;  %v2151_v63 = vmax.f32 %v2132_v56, 0.0  ;;  %v2159_v41 = vld [vmem:[#allocation2 + $0x40] sm:$0xff] }
 0x1e4   :  { %v3187_v0 = vpop.f32.mrb[77].mxu0 }
 0x1e5   :  { %v3233_v1 = vpop.f32.mrb[76].mxu1  ;;  %v2137_v4 = vadd.f32 %v3232_v59, %v2047_v61  ;;  %v3188_v3 = vadd.f32 %v3187_v0, %v3186_v62  ;;  %v2164_v5 = vsel %vm1144_vm0, %v2151_v63, 0.0  ;;  %v2160_v63 = vld [vmem:[#allocation2 + $0x48] sm:$0xf] }
 0x1e6   :  { %v3234_v53 = vpop.f32.mrb[77].mxu1  ;;  %2165 = vadd.xlane.f32.xlu0 %v2164_v5 }
 0x1e7   :  { %v3235_v6 = vadd.f32 %v3234_v53, %v3233_v1  ;;  %v2052_v7 = vadd.f32 %v3188_v3, %v1962_v26  ;;  %v3189_v8 = vpop.f32.mrb[78].mxu0  ;;  %v2152_v9 = vmax.f32 %v2137_v4, 0.0 }
 0x1e8   :  { %v3190_v10 = vpop.f32.mrb[79].mxu0 }
 0x1e9   :  { %v3236_v27 = vpop.f32.mrb[78].mxu1  ;;  %v2142_v11 = vadd.f32 %v3235_v6, %v2052_v7  ;;  %v3191_v2 = vadd.f32 %v3190_v10, %v3189_v8  ;;  %v2167_v14 = vsel %vm1144_vm0, %v2152_v9, 0.0 }
 0x1ea   :  { %v3237_v13 = vpop.f32.mrb[79].mxu1  ;;  %2168 = vadd.xlane.f32.xlu1 %v2167_v14 }
 0x1eb   :  { %v3238_v15 = vadd.f32 %v3237_v13, %v3236_v27  ;;  %v2057_v16 = vadd.f32 %v3191_v2, %v1967_v33  ;;  %v2153_v17 = vmax.f32 %v2142_v11, 0.0 }
 0x1ed   :  { %v2147_v34 = vadd.f32 %v3238_v15, %v2057_v16  ;;  %v2170_v18 = vsel %vm1144_vm0, %v2153_v17, 0.0 }
 0x1ee   :  { %2171 = vadd.xlane.f32.xlu0 %v2170_v18 }
 0x1ef   :  { %v1147_v12 = vpop.xlane.xlu1 %1146  ;;  %v2154_v20 = vmax.f32 %v2147_v34, %v5934_v36 }
 0x1f0   :  { %v1161_v21 = vadd.f32 %v1147_v12, %v1139_v19 }
 0x1f1   :  { %v2173_v22 = vsel %vm1157_vm3, %v2154_v20, 0.0 }
 0x1f2   :  { %1167 = vst.msk [vmem:[#allocation2] sm:$0xff] %vm20_vm1, %v1161_v21  ;;  %2174 = vadd.xlane.f32.xlu1 %v2173_v22 }
 0x1f3   :  { %v1150_v24 = vpop.xlane.xlu0 %1149 }
 0x1f4   :  { %v1162_v47 = vadd.f32 %v1150_v24, %v1140_v23 }
 0x1f6   :  { %1168 = vst.msk [vmem:[#allocation2 + $0x8] sm:$0xff] %vm20_vm1, %v1162_v47 }
 0x1f7   :  { %v1153_v26 = vpop.xlane.xlu0 %1152 }
 0x1f8   :  { %v1163_v28 = vadd.f32 %v1153_v26, %v1141_v25 }
 0x1f9   :  { %v2189_v29 = vld [vmem:[#allocation2] sm:$0xff] }
 0x1fa   :  { %v2199_v32 = vmul.f32 0.015625, %v2189_v29  ;;  %1169 = vst.msk [vmem:[#allocation2 + $0x10] sm:$0xff] %vm20_vm1, %v1163_v28 }
 0x1fb   :  { %v1156_v36 = vpop.xlane.xlu1 %1155 }
 0x1fc   :  { %2209 = vst.msk [vmem:[%s6013_s3] sm:$0xff] %vm20_vm1, %v2199_v32  ;;  %v1164_v33 = vadd.f32 %v1156_v36, %v1142_v31 }
 0x1fd   :  { %v2190_v35 = vld [vmem:[#allocation2 + $0x8] sm:$0xff] }
 0x1fe   :  { %v2200_v37 = vmul.f32 0.015625, %v2190_v35  ;;  %1170 = vst.msk [vmem:[#allocation2 + $0x18] sm:$0xff] %vm20_vm1, %v1164_v33 }
 0x1ff   :  { %v1160_v38 = vpop.xlane.xlu0 %1159 }
 0x200   :  { %2210 = vst.msk [vmem:[%s6013_s3 + $0x8] sm:$0xff] %vm20_vm1, %v2200_v37  ;;  %v1165_v39 = vadd.f32 %v1160_v38, %v1143_v60 }
 0x201   :  { %v2191_v40 = vld [vmem:[#allocation2 + $0x10] sm:$0xff] }
 0x202   :  { %v2201_v42 = vmul.f32 0.015625, %v2191_v40  ;;  %1172 = vst.msk [vmem:[#allocation2 + $0x20] sm:$0xf] %vm25_vm4, %v1165_v39 }
 0x204   :  { %2211 = vst.msk [vmem:[%s6013_s3 + $0x10] sm:$0xff] %vm20_vm1, %v2201_v42 }
 0x205   :  { %v2192_v43 = vld [vmem:[#allocation2 + $0x18] sm:$0xff] }
 0x206   :  { %v2202_v45 = vmul.f32 0.015625, %v2192_v43 }
 0x208   :  { %2212 = vst.msk [vmem:[%s6013_s3 + $0x18] sm:$0xff] %vm20_vm1, %v2202_v45 }
 0x209   :  { %v2193_v44 = vld [vmem:[#allocation2 + $0x20] sm:$0xf] }
 0x20a   :  { %v2203_v46 = vmul.f32 0.015625, %v2193_v44 }
 0x20c   :  { %2214 = vst.msk [vmem:[%s6013_s3 + $0x20] sm:$0x3] %vm2213_vm5, %v2203_v46 }
 0x20d   :  { %2221 = vst.msk [vmem:[%s6014_s4 - $0x2] sm:$0xc] %vm2220_vm6, %v2203_v46 }
 0x26f   :  { %v2163_v30 = vpop.xlane.xlu1 %2162 }
 0x270   :  { %v2176_v49 = vadd.f32 %v2163_v30, %v2156_v48 }
 0x272   :  { %2181 = vst.msk [vmem:[#allocation2 + $0x28] sm:$0xff] %vm20_vm1, %v2176_v49 }
 0x273   :  { %v2166_v51 = vpop.xlane.xlu0 %2165 }
 0x274   :  { %v2177_v52 = vadd.f32 %v2166_v51, %v2157_v50 }
 0x276   :  { %2182 = vst.msk [vmem:[#allocation2 + $0x30] sm:$0xff] %vm20_vm1, %v2177_v52 }
 0x277   :  { %v2169_v55 = vpop.xlane.xlu1 %2168 }
 0x278   :  { %v2178_v56 = vadd.f32 %v2169_v55, %v2158_v54 }
 0x279   :  { %v2194_v57 = vld [vmem:[#allocation2 + $0x28] sm:$0xff] }
 0x27a   :  { %v2204_v58 = vmul.f32 0.015625, %v2194_v57  ;;  %2183 = vst.msk [vmem:[#allocation2 + $0x38] sm:$0xff] %vm20_vm1, %v2178_v56 }
 0x27b   :  { %v2172_v59 = vpop.xlane.xlu0 %2171 }
 0x27c   :  { %2215 = vst.msk [vmem:[%s6013_s3 + $0x28] sm:$0xff] %vm20_vm1, %v2204_v58  ;;  %v2179_v61 = vadd.f32 %v2172_v59, %v2159_v41 }
 0x27d   :  { %v2195_v62 = vld [vmem:[#allocation2 + $0x30] sm:$0xff] }
 0x27e   :  { %v2205_v0 = vmul.f32 0.015625, %v2195_v62  ;;  %2184 = vst.msk [vmem:[#allocation2 + $0x40] sm:$0xff] %vm20_vm1, %v2179_v61 }
 0x27f   :  { %v2175_v1 = vpop.xlane.xlu1 %2174 }
 0x280   :  { %2216 = vst.msk [vmem:[%s6013_s3 + $0x30] sm:$0xff] %vm20_vm1, %v2205_v0  ;;  %v2180_v4 = vadd.f32 %v2175_v1, %v2160_v63 }
 0x281   :  { %v2196_v3 = vld [vmem:[#allocation2 + $0x38] sm:$0xff] }
 0x282   :  { %v2206_v53 = vmul.f32 0.015625, %v2196_v3  ;;  %2185 = vst.msk [vmem:[#allocation2 + $0x48] sm:$0xf] %vm25_vm4, %v2180_v4 }
 0x284   :  { %2217 = vst.msk [vmem:[%s6013_s3 + $0x38] sm:$0xff] %vm20_vm1, %v2206_v53 }
 0x285   :  { %v2197_v5 = vld [vmem:[#allocation2 + $0x40] sm:$0xff] }
 0x286   :  { %v2207_v6 = vmul.f32 0.015625, %v2197_v5 }
 0x288   :  { %2218 = vst.msk [vmem:[%s6013_s3 + $0x40] sm:$0xff] %vm20_vm1, %v2207_v6 }
 0x289   :  { %v2198_v7 = vld [vmem:[#allocation2 + $0x48] sm:$0xf] }
 0x28a   :  { %v2208_v8 = vmul.f32 0.015625, %v2198_v7 }
 0x28c   :  { %2219 = vst.msk [vmem:[%s6013_s3 + $0x48] sm:$0x3] %vm2213_vm5, %v2208_v8 }
 0x28d   :  { %2222 = vst.msk [vmem:[%s6014_s4] sm:$0xc] %vm2220_vm6, %v2208_v8 }

</bundles_post_ra>
